<compile_context>
chip_gen: v7x
topology: tpu7x:2x2x1
jax: 0.10.0
libtpu: 0.0.40
codegen_flags: <defaults>
</compile_context>

<pallas_src>
import functools

import jax
import jax.numpy as jnp
from jax.experimental import pallas as pl
from jax.experimental.pallas import tpu as pltpu


def _fused_upsample_conv_kernel(x_m1, x_0, x_p1, w_ref, b_ref, o_ref, *,
                                wp, col_chunk):
    """One (batch, depth-plane) step of the fused upsample + circular conv.

    x_m1/x_0/x_p1 : (Hp*Wp, Cin) row-flattened padded planes at original depths
                    (d-1) % D, d, (d+1) % D  (circular depth wrap via index_map).
    w_ref         : (27, Cin, 8*Cout) collapsed weights (upsample folded in),
                    tap index t = i*9 + j*3 + k for window offsets (i, j, k).
    b_ref         : (1, 8*Cout) parity-tiled f32 bias.
    o_ref         : (H*Wp, 8*Cout) output tile; rows are (h, w) over the padded
                    width (columns w >= W are junk, trimmed by the wrapper).
    """
    planes = (x_m1, x_0, x_p1)
    r_out = o_ref.shape[0]
    c8 = o_ref.shape[1]

    # Chunk output columns so the f32 accumulator stays vreg-resident.
    for c0 in range(0, c8, col_chunk):
        cs = min(col_chunk, c8 - c0)
        # Accumulator starts at the broadcast bias chunk (no epilogue add).
        acc = jnp.broadcast_to(b_ref[:, c0:c0 + cs], (r_out, cs))
        acc = acc.astype(jnp.float32)
        t = 0
        for i in range(3):          # depth window offset -> which plane
            for j in range(3):      # height window offset -> row shift j*Wp
                for k in range(3):  # width window offset  -> row shift k
                    # Contiguous (static-offset) row window: pure view, no copy.
                    lhs = planes[i][pl.ds(j * wp + k, r_out), :]
                    acc = acc + jnp.dot(lhs, w_ref[t, :, c0:c0 + cs],
                                        preferred_element_type=jnp.float32)
                    t += 1
        o_ref[:, c0:c0 + cs] = acc.astype(o_ref.dtype)


def _collapse_weights(weight_oidhw):
    """Fold the nearest-x2 upsample into the Conv3d weights.

    Returns (27, Cin, 8*Cout): for window offset (i, j, k) in {0,1,2}^3 of the
    circularly padded ORIGINAL-resolution input, the (Cin, 8*Cout) weight that
    produces all 8 output parities (pd, ph, pw), parity-major / Cout-minor.
    """
    cout, cin = weight_oidhw.shape[0], weight_oidhw.shape[1]
    w = jnp.transpose(weight_oidhw, (2, 3, 4, 1, 0))        # (kd, kh, kw, Cin, Cout)
    # c3[p, i, kk]: contribution of original tap kk at padded window offset i
    # for output parity p (from y[2d+p] = sum_k w[k] * x[(2d+p+k-1)//2]).
    c3 = jnp.array([[[1., 0., 0.], [0., 1., 1.], [0., 0., 0.]],
                    [[0., 0., 0.], [1., 1., 0.], [0., 0., 1.]]], dtype=w.dtype)
    wc = jnp.einsum("pia,qjb,rkc,abcxo->ijkxpqro", c3, c3, c3, w)
    return wc.reshape(27, cin, 8 * cout)


def _pick_col_chunk(c8, rows):
    """Largest column chunk keeping the f32 accumulator around <=128 KiB."""
    budget_elems = (128 * 1024) // 4
    max_cols = max(1, budget_elems // max(rows, 1))
    if c8 <= max_cols:
        return c8
    if max_cols >= 128:
        return (max_cols // 128) * 128                # lane-dense chunks
    return max_cols


def _pick_vmem_limit(per_step_bytes):
    """Scoped VMEM limit: enough for double-buffered blocks, <=75% of physical."""
    try:
        cap = int(pltpu.get_tpu_info().vmem_capacity_bytes)
    except Exception:
        cap = 64 * 1024 * 1024                        # assume the smallest (v7x)
    need = 2 * per_step_bytes + (4 << 20)
    return int(min(max(need, 32 * 1024 * 1024), (cap * 3) // 4))


def _upsample_conv3d_pallas(x_ndhwc, w_flat, b_flat):
    """Fused nearest-x2 upsample + 3x3x3 circular conv (Pallas kernel).

    Returns (N, D, H*(W+2), 8*Cout): per original depth plane, rows are (h, w)
    over the W-padded width (2 junk columns), columns are (pd, ph, pw, cout).
    """
    N, D, H, W, Cin = x_ndhwc.shape
    c8 = w_flat.shape[-1]

    # Circular H/W pad at ORIGINAL resolution (depth wrap lives in index_maps).
    # One extra bottom H row keeps every shifted full-width row window of the
    # kernel in bounds; it only feeds junk (trimmed) output columns.
    xp = jnp.pad(x_ndhwc, ((0, 0), (0, 0), (1, 2), (1, 1), (0, 0)), mode="wrap")
    hp, wp = H + 3, W + 2
    r_in, r_out = hp * wp, H * wp
    xp = xp.reshape(N, D, r_in, Cin)                  # free view: row-flattened planes

    col_chunk = _pick_col_chunk(c8, r_out)
    per_step = ((3 * r_in * Cin + r_out * c8) * x_ndhwc.dtype.itemsize
                + 27 * Cin * c8 * w_flat.dtype.itemsize + c8 * 4)

    kernel = functools.partial(_fused_upsample_conv_kernel,
                               wp=wp, col_chunk=col_chunk)

    def plane_spec(off):
        # Circular depth wrap handled here: block index (d + off) mod D.
        return pl.BlockSpec((None, None, r_in, Cin),
                            lambda n, d: (n, (d + D + off) % D, 0, 0))

    return pl.pallas_call(
        kernel,
        out_shape=jax.ShapeDtypeStruct((N, D, r_out, c8), x_ndhwc.dtype),
        grid_spec=pltpu.PrefetchScalarGridSpec(
            num_scalar_prefetch=0,
            grid=(N, D),
            in_specs=[
                plane_spec(-1),                       # depth d-1 (wrap)
                plane_spec(0),                        # depth d
                plane_spec(1),                        # depth d+1 (wrap)
                # Collapsed weights + bias: constant index_map -> fetched once
                # and kept VMEM-resident across the whole grid.
                pl.BlockSpec((27, Cin, c8), lambda n, d: (0, 0, 0)),
                pl.BlockSpec((1, c8), lambda n, d: (0, 0)),
            ],
            out_specs=pl.BlockSpec((None, None, r_out, c8),
                                   lambda n, d: (n, d, 0, 0)),
        ),
        compiler_params=pltpu.CompilerParams(
            dimension_semantics=("parallel", "parallel"),
            vmem_limit_bytes=_pick_vmem_limit(per_step),
        ),
    )(xp, xp, xp, w_flat, b_flat)


def upsample3d_forward(x_ncdhw, weight_oidhw, bias, *, use_conv=True,
                       use_conv_transpose=False, interpolate=True,
                       output_size=None, compute_dtype=None):
    """Mirrors Upsample3D.forward (the use_conv + interpolate path is fused).

    x_ncdhw: (N, C, D, H, W); weight_oidhw: (Cout, Cin, 3, 3, 3); bias: (Cout,).
    compute_dtype: optionally e.g. jnp.bfloat16 to halve HBM/VMEM traffic
    (accumulation stays f32).
    """
    if use_conv_transpose:
        raise NotImplementedError  # TODO(synk): ConvTranspose3d path not implemented.
    if output_size is not None:
        raise NotImplementedError  # TODO(synk): explicit output_size resize not implemented.

    x = jnp.transpose(x_ncdhw, (0, 2, 3, 4, 1))       # NCDHW -> NDHWC (fuses with pad)
    N, D, H, W, _ = x.shape

    if interpolate and use_conv:
        cout = weight_oidhw.shape[0]
        dt = compute_dtype or x.dtype
        w_flat = _collapse_weights(weight_oidhw.astype(dt))
        b_flat = jnp.tile(bias.astype(jnp.float32), 8).reshape(1, 8 * cout)
        out = _upsample_conv3d_pallas(x.astype(dt), w_flat, b_flat)
        # (N, D, H*(W+2), 8*Cout): trim junk width columns and interleave the 8
        # parities -> NCDHW.  The slice fuses into the single XLA transpose.
        out = out.reshape(N, D, H, W + 2, 2, 2, 2, cout)[:, :, :, :W]
        out = jnp.transpose(out, (0, 7, 1, 4, 2, 5, 3, 6))
        return out.reshape(N, cout, 2 * D, 2 * H, 2 * W).astype(x_ncdhw.dtype)

    if interpolate:  # nearest x2 only (pure data movement -> glue)
        x = jnp.repeat(jnp.repeat(jnp.repeat(x, 2, axis=1), 2, axis=2), 2, axis=3)
        return jnp.transpose(x, (0, 4, 1, 2, 3))

    if use_conv:
        # TODO(synk): plain (non-upsampling) circular conv path not implemented.
        raise NotImplementedError
    return x_ncdhw


def upsample3d_reference(x_ncdhw, weight_oidhw, bias):
    """Pure-JAX reference (materialized upsample + circular pad + conv)."""
    x = jnp.transpose(x_ncdhw, (0, 2, 3, 4, 1))
    x = jnp.repeat(jnp.repeat(jnp.repeat(x, 2, axis=1), 2, axis=2), 2, axis=3)
    xp = jnp.pad(x, ((0, 0), (1, 1), (1, 1), (1, 1), (0, 0)), mode="wrap")
    w = jnp.transpose(weight_oidhw, (2, 3, 4, 1, 0))
    y = jax.lax.conv_general_dilated(
        xp, w, window_strides=(1, 1, 1), padding="VALID",
        dimension_numbers=("NDHWC", "DHWIO", "NDHWC"))
    y = y + bias.reshape(1, 1, 1, 1, -1)
    return jnp.transpose(y, (0, 4, 1, 2, 3))


if __name__ == "__main__":
    key = jax.random.PRNGKey(0)
    k_x, k_w, k_b = jax.random.split(key, 3)

    N, C, D, H, W = 2, 4, 4, 8, 8           # small input (PyTorch NCDHW)
    Cout = C                                 # out_channels defaults to channels
    x = jax.random.normal(k_x, (N, C, D, H, W), dtype=jnp.float32)
    weight = 0.1 * jax.random.normal(k_w, (Cout, C, 3, 3, 3), dtype=jnp.float32)
    bias = 0.1 * jax.random.normal(k_b, (Cout,), dtype=jnp.float32)

    fwd = jax.jit(upsample3d_forward)
    out = jax.block_until_ready(fwd(x, weight, bias))

    ref = jax.block_until_ready(upsample3d_reference(x, weight, bias))
    assert out.shape == (N, Cout, 2 * D, 2 * H, 2 * W), out.shape
    max_err = float(jnp.max(jnp.abs(out - ref)))
    assert jnp.allclose(out, ref, atol=1e-4, rtol=1e-4), max_err

    print("KERNEL_OK")
</pallas_src>

<mosaic_0001>
module attributes {stable_mosaic.version = 11 : i64} {
  func.func @_fused_upsample_conv_kernel(%arg0: i32, %arg1: i32, %arg2: memref<1x1x110x4xf32, #tpu.memory_space<vmem>>, %arg3: memref<1x1x110x4xf32, #tpu.memory_space<vmem>>, %arg4: memref<1x1x110x4xf32, #tpu.memory_space<vmem>>, %arg5: memref<27x4x32xf32, #tpu.memory_space<vmem>>, %arg6: memref<1x32xf32, #tpu.memory_space<vmem>>, %arg7: memref<1x1x80x32xf32, #tpu.memory_space<vmem>>) attributes {dimension_semantics = [#tpu.dimension_semantics<parallel>, #tpu.dimension_semantics<parallel>], iteration_bounds = array<i64: 2, 4>, scalar_prefetch = 0 : i64, scratch_operands = 0 : i64, tpu.core_type = #tpu.core_type<tc>, window_params = [{transform_indices = @transform_0, window_bounds = array<i64: 1, 1, 110, 4>}, {transform_indices = @transform_1, window_bounds = array<i64: 1, 1, 110, 4>}, {transform_indices = @transform_2, window_bounds = array<i64: 1, 1, 110, 4>}, {pipeline_mode = #tpu.pipeline_mode<synchronous>, transform_indices = @transform_3, window_bounds = array<i64: 27, 4, 32>}, {pipeline_mode = #tpu.pipeline_mode<synchronous>, transform_indices = @transform_4, window_bounds = array<i64: 1, 32>}, {transform_indices = @transform_5, window_bounds = array<i64: 1, 1, 80, 32>}]} {
    %c0 = arith.constant 0 : index
    %c0_0 = arith.constant 0 : index
    %0 = vector.load %arg6[%c0, %c0_0] : memref<1x32xf32, #tpu.memory_space<vmem>>, vector<1x32xf32>
    %1 = vector.shape_cast %0 : vector<1x32xf32> to vector<1x32xf32>
    %2 = vector.broadcast %1 : vector<1x32xf32> to vector<80x32xf32>
    %c0_1 = arith.constant 0 : index
    %c0_2 = arith.constant 0 : index
    %c0_3 = arith.constant 0 : index
    %c0_4 = arith.constant 0 : index
    %3 = vector.load %arg2[%c0_1, %c0_2, %c0_3, %c0_4] : memref<1x1x110x4xf32, #tpu.memory_space<vmem>>, vector<1x1x80x4xf32>
    %4 = vector.shape_cast %3 : vector<1x1x80x4xf32> to vector<80x4xf32>
    %c0_5 = arith.constant 0 : index
    %c0_6 = arith.constant 0 : index
    %c0_7 = arith.constant 0 : index
    %5 = vector.load %arg5[%c0_5, %c0_6, %c0_7] : memref<27x4x32xf32, #tpu.memory_space<vmem>>, vector<1x4x32xf32>
    %6 = vector.shape_cast %5 : vector<1x4x32xf32> to vector<4x32xf32>
    %cst = arith.constant dense<0.000000e+00> : vector<80x32xf32>
    %7 = tpu.matmul %4, %6, %cst {dimension_numbers = #tpu.dot_dimension_numbers<[1], [0], [0], [1], [0, 0, 1, 1], [], []>} : vector<80x4xf32>, vector<4x32xf32>, vector<80x32xf32> -> vector<80x32xf32>
    %8 = arith.addf %2, %7 : vector<80x32xf32>
    %c0_8 = arith.constant 0 : index
    %c0_9 = arith.constant 0 : index
    %c1 = arith.constant 1 : index
    %c0_10 = arith.constant 0 : index
    %9 = vector.load %arg2[%c0_8, %c0_9, %c1, %c0_10] : memref<1x1x110x4xf32, #tpu.memory_space<vmem>>, vector<1x1x80x4xf32>
    %10 = vector.shape_cast %9 : vector<1x1x80x4xf32> to vector<80x4xf32>
    %c1_11 = arith.constant 1 : index
    %c0_12 = arith.constant 0 : index
    %c0_13 = arith.constant 0 : index
    %11 = vector.load %arg5[%c1_11, %c0_12, %c0_13] : memref<27x4x32xf32, #tpu.memory_space<vmem>>, vector<1x4x32xf32>
    %12 = vector.shape_cast %11 : vector<1x4x32xf32> to vector<4x32xf32>
    %cst_14 = arith.constant dense<0.000000e+00> : vector<80x32xf32>
    %13 = tpu.matmul %10, %12, %cst_14 {dimension_numbers = #tpu.dot_dimension_numbers<[1], [0], [0], [1], [0, 0, 1, 1], [], []>} : vector<80x4xf32>, vector<4x32xf32>, vector<80x32xf32> -> vector<80x32xf32>
    %14 = arith.addf %8, %13 : vector<80x32xf32>
    %c0_15 = arith.constant 0 : index
    %c0_16 = arith.constant 0 : index
    %c2 = arith.constant 2 : index
    %c0_17 = arith.constant 0 : index
    %15 = vector.load %arg2[%c0_15, %c0_16, %c2, %c0_17] : memref<1x1x110x4xf32, #tpu.memory_space<vmem>>, vector<1x1x80x4xf32>
    %16 = vector.shape_cast %15 : vector<1x1x80x4xf32> to vector<80x4xf32>
    %c2_18 = arith.constant 2 : index
    %c0_19 = arith.constant 0 : index
    %c0_20 = arith.constant 0 : index
    %17 = vector.load %arg5[%c2_18, %c0_19, %c0_20] : memref<27x4x32xf32, #tpu.memory_space<vmem>>, vector<1x4x32xf32>
    %18 = vector.shape_cast %17 : vector<1x4x32xf32> to vector<4x32xf32>
    %cst_21 = arith.constant dense<0.000000e+00> : vector<80x32xf32>
    %19 = tpu.matmul %16, %18, %cst_21 {dimension_numbers = #tpu.dot_dimension_numbers<[1], [0], [0], [1], [0, 0, 1, 1], [], []>} : vector<80x4xf32>, vector<4x32xf32>, vector<80x32xf32> -> vector<80x32xf32>
    %20 = arith.addf %14, %19 : vector<80x32xf32>
    %c0_22 = arith.constant 0 : index
    %c0_23 = arith.constant 0 : index
    %c10 = arith.constant 10 : index
    %c0_24 = arith.constant 0 : index
    %21 = vector.load %arg2[%c0_22, %c0_23, %c10, %c0_24] : memref<1x1x110x4xf32, #tpu.memory_space<vmem>>, vector<1x1x80x4xf32>
    %22 = vector.shape_cast %21 : vector<1x1x80x4xf32> to vector<80x4xf32>
    %c3 = arith.constant 3 : index
    %c0_25 = arith.constant 0 : index
    %c0_26 = arith.constant 0 : index
    %23 = vector.load %arg5[%c3, %c0_25, %c0_26] : memref<27x4x32xf32, #tpu.memory_space<vmem>>, vector<1x4x32xf32>
    %24 = vector.shape_cast %23 : vector<1x4x32xf32> to vector<4x32xf32>
    %cst_27 = arith.constant dense<0.000000e+00> : vector<80x32xf32>
    %25 = tpu.matmul %22, %24, %cst_27 {dimension_numbers = #tpu.dot_dimension_numbers<[1], [0], [0], [1], [0, 0, 1, 1], [], []>} : vector<80x4xf32>, vector<4x32xf32>, vector<80x32xf32> -> vector<80x32xf32>
    %26 = arith.addf %20, %25 : vector<80x32xf32>
    %c0_28 = arith.constant 0 : index
    %c0_29 = arith.constant 0 : index
    %c11 = arith.constant 11 : index
    %c0_30 = arith.constant 0 : index
    %27 = vector.load %arg2[%c0_28, %c0_29, %c11, %c0_30] : memref<1x1x110x4xf32, #tpu.memory_space<vmem>>, vector<1x1x80x4xf32>
    %28 = vector.shape_cast %27 : vector<1x1x80x4xf32> to vector<80x4xf32>
    %c4 = arith.constant 4 : index
    %c0_31 = arith.constant 0 : index
    %c0_32 = arith.constant 0 : index
    %29 = vector.load %arg5[%c4, %c0_31, %c0_32] : memref<27x4x32xf32, #tpu.memory_space<vmem>>, vector<1x4x32xf32>
    %30 = vector.shape_cast %29 : vector<1x4x32xf32> to vector<4x32xf32>
    %cst_33 = arith.constant dense<0.000000e+00> : vector<80x32xf32>
    %31 = tpu.matmul %28, %30, %cst_33 {dimension_numbers = #tpu.dot_dimension_numbers<[1], [0], [0], [1], [0, 0, 1, 1], [], []>} : vector<80x4xf32>, vector<4x32xf32>, vector<80x32xf32> -> vector<80x32xf32>
    %32 = arith.addf %26, %31 : vector<80x32xf32>
    %c0_34 = arith.constant 0 : index
    %c0_35 = arith.constant 0 : index
    %c12 = arith.constant 12 : index
    %c0_36 = arith.constant 0 : index
    %33 = vector.load %arg2[%c0_34, %c0_35, %c12, %c0_36] : memref<1x1x110x4xf32, #tpu.memory_space<vmem>>, vector<1x1x80x4xf32>
    %34 = vector.shape_cast %33 : vector<1x1x80x4xf32> to vector<80x4xf32>
    %c5 = arith.constant 5 : index
    %c0_37 = arith.constant 0 : index
    %c0_38 = arith.constant 0 : index
    %35 = vector.load %arg5[%c5, %c0_37, %c0_38] : memref<27x4x32xf32, #tpu.memory_space<vmem>>, vector<1x4x32xf32>
    %36 = vector.shape_cast %35 : vector<1x4x32xf32> to vector<4x32xf32>
    %cst_39 = arith.constant dense<0.000000e+00> : vector<80x32xf32>
    %37 = tpu.matmul %34, %36, %cst_39 {dimension_numbers = #tpu.dot_dimension_numbers<[1], [0], [0], [1], [0, 0, 1, 1], [], []>} : vector<80x4xf32>, vector<4x32xf32>, vector<80x32xf32> -> vector<80x32xf32>
    %38 = arith.addf %32, %37 : vector<80x32xf32>
    %c0_40 = arith.constant 0 : index
    %c0_41 = arith.constant 0 : index
    %c20 = arith.constant 20 : index
    %c0_42 = arith.constant 0 : index
    %39 = vector.load %arg2[%c0_40, %c0_41, %c20, %c0_42] : memref<1x1x110x4xf32, #tpu.memory_space<vmem>>, vector<1x1x80x4xf32>
    %40 = vector.shape_cast %39 : vector<1x1x80x4xf32> to vector<80x4xf32>
    %c6 = arith.constant 6 : index
    %c0_43 = arith.constant 0 : index
    %c0_44 = arith.constant 0 : index
    %41 = vector.load %arg5[%c6, %c0_43, %c0_44] : memref<27x4x32xf32, #tpu.memory_space<vmem>>, vector<1x4x32xf32>
    %42 = vector.shape_cast %41 : vector<1x4x32xf32> to vector<4x32xf32>
    %cst_45 = arith.constant dense<0.000000e+00> : vector<80x32xf32>
    %43 = tpu.matmul %40, %42, %cst_45 {dimension_numbers = #tpu.dot_dimension_numbers<[1], [0], [0], [1], [0, 0, 1, 1], [], []>} : vector<80x4xf32>, vector<4x32xf32>, vector<80x32xf32> -> vector<80x32xf32>
    %44 = arith.addf %38, %43 : vector<80x32xf32>
    %c0_46 = arith.constant 0 : index
    %c0_47 = arith.constant 0 : index
    %c21 = arith.constant 21 : index
    %c0_48 = arith.constant 0 : index
    %45 = vector.load %arg2[%c0_46, %c0_47, %c21, %c0_48] : memref<1x1x110x4xf32, #tpu.memory_space<vmem>>, vector<1x1x80x4xf32>
    %46 = vector.shape_cast %45 : vector<1x1x80x4xf32> to vector<80x4xf32>
    %c7 = arith.constant 7 : index
    %c0_49 = arith.constant 0 : index
    %c0_50 = arith.constant 0 : index
    %47 = vector.load %arg5[%c7, %c0_49, %c0_50] : memref<27x4x32xf32, #tpu.memory_space<vmem>>, vector<1x4x32xf32>
    %48 = vector.shape_cast %47 : vector<1x4x32xf32> to vector<4x32xf32>
    %cst_51 = arith.constant dense<0.000000e+00> : vector<80x32xf32>
    %49 = tpu.matmul %46, %48, %cst_51 {dimension_numbers = #tpu.dot_dimension_numbers<[1], [0], [0], [1], [0, 0, 1, 1], [], []>} : vector<80x4xf32>, vector<4x32xf32>, vector<80x32xf32> -> vector<80x32xf32>
    %50 = arith.addf %44, %49 : vector<80x32xf32>
    %c0_52 = arith.constant 0 : index
    %c0_53 = arith.constant 0 : index
    %c22 = arith.constant 22 : index
    %c0_54 = arith.constant 0 : index
    %51 = vector.load %arg2[%c0_52, %c0_53, %c22, %c0_54] : memref<1x1x110x4xf32, #tpu.memory_space<vmem>>, vector<1x1x80x4xf32>
    %52 = vector.shape_cast %51 : vector<1x1x80x4xf32> to vector<80x4xf32>
    %c8 = arith.constant 8 : index
    %c0_55 = arith.constant 0 : index
    %c0_56 = arith.constant 0 : index
    %53 = vector.load %arg5[%c8, %c0_55, %c0_56] : memref<27x4x32xf32, #tpu.memory_space<vmem>>, vector<1x4x32xf32>
    %54 = vector.shape_cast %53 : vector<1x4x32xf32> to vector<4x32xf32>
    %cst_57 = arith.constant dense<0.000000e+00> : vector<80x32xf32>
    %55 = tpu.matmul %52, %54, %cst_57 {dimension_numbers = #tpu.dot_dimension_numbers<[1], [0], [0], [1], [0, 0, 1, 1], [], []>} : vector<80x4xf32>, vector<4x32xf32>, vector<80x32xf32> -> vector<80x32xf32>
    %56 = arith.addf %50, %55 : vector<80x32xf32>
    %c0_58 = arith.constant 0 : index
    %c0_59 = arith.constant 0 : index
    %c0_60 = arith.constant 0 : index
    %c0_61 = arith.constant 0 : index
    %57 = vector.load %arg3[%c0_58, %c0_59, %c0_60, %c0_61] : memref<1x1x110x4xf32, #tpu.memory_space<vmem>>, vector<1x1x80x4xf32>
    %58 = vector.shape_cast %57 : vector<1x1x80x4xf32> to vector<80x4xf32>
    %c9 = arith.constant 9 : index
    %c0_62 = arith.constant 0 : index
    %c0_63 = arith.constant 0 : index
    %59 = vector.load %arg5[%c9, %c0_62, %c0_63] : memref<27x4x32xf32, #tpu.memory_space<vmem>>, vector<1x4x32xf32>
    %60 = vector.shape_cast %59 : vector<1x4x32xf32> to vector<4x32xf32>
    %cst_64 = arith.constant dense<0.000000e+00> : vector<80x32xf32>
    %61 = tpu.matmul %58, %60, %cst_64 {dimension_numbers = #tpu.dot_dimension_numbers<[1], [0], [0], [1], [0, 0, 1, 1], [], []>} : vector<80x4xf32>, vector<4x32xf32>, vector<80x32xf32> -> vector<80x32xf32>
    %62 = arith.addf %56, %61 : vector<80x32xf32>
    %c0_65 = arith.constant 0 : index
    %c0_66 = arith.constant 0 : index
    %c1_67 = arith.constant 1 : index
    %c0_68 = arith.constant 0 : index
    %63 = vector.load %arg3[%c0_65, %c0_66, %c1_67, %c0_68] : memref<1x1x110x4xf32, #tpu.memory_space<vmem>>, vector<1x1x80x4xf32>
    %64 = vector.shape_cast %63 : vector<1x1x80x4xf32> to vector<80x4xf32>
    %c10_69 = arith.constant 10 : index
    %c0_70 = arith.constant 0 : index
    %c0_71 = arith.constant 0 : index
    %65 = vector.load %arg5[%c10_69, %c0_70, %c0_71] : memref<27x4x32xf32, #tpu.memory_space<vmem>>, vector<1x4x32xf32>
    %66 = vector.shape_cast %65 : vector<1x4x32xf32> to vector<4x32xf32>
    %cst_72 = arith.constant dense<0.000000e+00> : vector<80x32xf32>
    %67 = tpu.matmul %64, %66, %cst_72 {dimension_numbers = #tpu.dot_dimension_numbers<[1], [0], [0], [1], [0, 0, 1, 1], [], []>} : vector<80x4xf32>, vector<4x32xf32>, vector<80x32xf32> -> vector<80x32xf32>
    %68 = arith.addf %62, %67 : vector<80x32xf32>
    %c0_73 = arith.constant 0 : index
    %c0_74 = arith.constant 0 : index
    %c2_75 = arith.constant 2 : index
    %c0_76 = arith.constant 0 : index
    %69 = vector.load %arg3[%c0_73, %c0_74, %c2_75, %c0_76] : memref<1x1x110x4xf32, #tpu.memory_space<vmem>>, vector<1x1x80x4xf32>
    %70 = vector.shape_cast %69 : vector<1x1x80x4xf32> to vector<80x4xf32>
    %c11_77 = arith.constant 11 : index
    %c0_78 = arith.constant 0 : index
    %c0_79 = arith.constant 0 : index
    %71 = vector.load %arg5[%c11_77, %c0_78, %c0_79] : memref<27x4x32xf32, #tpu.memory_space<vmem>>, vector<1x4x32xf32>
    %72 = vector.shape_cast %71 : vector<1x4x32xf32> to vector<4x32xf32>
    %cst_80 = arith.constant dense<0.000000e+00> : vector<80x32xf32>
    %73 = tpu.matmul %70, %72, %cst_80 {dimension_numbers = #tpu.dot_dimension_numbers<[1], [0], [0], [1], [0, 0, 1, 1], [], []>} : vector<80x4xf32>, vector<4x32xf32>, vector<80x32xf32> -> vector<80x32xf32>
    %74 = arith.addf %68, %73 : vector<80x32xf32>
    %c0_81 = arith.constant 0 : index
    %c0_82 = arith.constant 0 : index
    %c10_83 = arith.constant 10 : index
    %c0_84 = arith.constant 0 : index
    %75 = vector.load %arg3[%c0_81, %c0_82, %c10_83, %c0_84] : memref<1x1x110x4xf32, #tpu.memory_space<vmem>>, vector<1x1x80x4xf32>
    %76 = vector.shape_cast %75 : vector<1x1x80x4xf32> to vector<80x4xf32>
    %c12_85 = arith.constant 12 : index
    %c0_86 = arith.constant 0 : index
    %c0_87 = arith.constant 0 : index
    %77 = vector.load %arg5[%c12_85, %c0_86, %c0_87] : memref<27x4x32xf32, #tpu.memory_space<vmem>>, vector<1x4x32xf32>
    %78 = vector.shape_cast %77 : vector<1x4x32xf32> to vector<4x32xf32>
    %cst_88 = arith.constant dense<0.000000e+00> : vector<80x32xf32>
    %79 = tpu.matmul %76, %78, %cst_88 {dimension_numbers = #tpu.dot_dimension_numbers<[1], [0], [0], [1], [0, 0, 1, 1], [], []>} : vector<80x4xf32>, vector<4x32xf32>, vector<80x32xf32> -> vector<80x32xf32>
    %80 = arith.addf %74, %79 : vector<80x32xf32>
    %c0_89 = arith.constant 0 : index
    %c0_90 = arith.constant 0 : index
    %c11_91 = arith.constant 11 : index
    %c0_92 = arith.constant 0 : index
    %81 = vector.load %arg3[%c0_89, %c0_90, %c11_91, %c0_92] : memref<1x1x110x4xf32, #tpu.memory_space<vmem>>, vector<1x1x80x4xf32>
    %82 = vector.shape_cast %81 : vector<1x1x80x4xf32> to vector<80x4xf32>
    %c13 = arith.constant 13 : index
    %c0_93 = arith.constant 0 : index
    %c0_94 = arith.constant 0 : index
    %83 = vector.load %arg5[%c13, %c0_93, %c0_94] : memref<27x4x32xf32, #tpu.memory_space<vmem>>, vector<1x4x32xf32>
    %84 = vector.shape_cast %83 : vector<1x4x32xf32> to vector<4x32xf32>
    %cst_95 = arith.constant dense<0.000000e+00> : vector<80x32xf32>
    %85 = tpu.matmul %82, %84, %cst_95 {dimension_numbers = #tpu.dot_dimension_numbers<[1], [0], [0], [1], [0, 0, 1, 1], [], []>} : vector<80x4xf32>, vector<4x32xf32>, vector<80x32xf32> -> vector<80x32xf32>
    %86 = arith.addf %80, %85 : vector<80x32xf32>
    %c0_96 = arith.constant 0 : index
    %c0_97 = arith.constant 0 : index
    %c12_98 = arith.constant 12 : index
    %c0_99 = arith.constant 0 : index
    %87 = vector.load %arg3[%c0_96, %c0_97, %c12_98, %c0_99] : memref<1x1x110x4xf32, #tpu.memory_space<vmem>>, vector<1x1x80x4xf32>
    %88 = vector.shape_cast %87 : vector<1x1x80x4xf32> to vector<80x4xf32>
    %c14 = arith.constant 14 : index
    %c0_100 = arith.constant 0 : index
    %c0_101 = arith.constant 0 : index
    %89 = vector.load %arg5[%c14, %c0_100, %c0_101] : memref<27x4x32xf32, #tpu.memory_space<vmem>>, vector<1x4x32xf32>
    %90 = vector.shape_cast %89 : vector<1x4x32xf32> to vector<4x32xf32>
    %cst_102 = arith.constant dense<0.000000e+00> : vector<80x32xf32>
    %91 = tpu.matmul %88, %90, %cst_102 {dimension_numbers = #tpu.dot_dimension_numbers<[1], [0], [0], [1], [0, 0, 1, 1], [], []>} : vector<80x4xf32>, vector<4x32xf32>, vector<80x32xf32> -> vector<80x32xf32>
    %92 = arith.addf %86, %91 : vector<80x32xf32>
    %c0_103 = arith.constant 0 : index
    %c0_104 = arith.constant 0 : index
    %c20_105 = arith.constant 20 : index
    %c0_106 = arith.constant 0 : index
    %93 = vector.load %arg3[%c0_103, %c0_104, %c20_105, %c0_106] : memref<1x1x110x4xf32, #tpu.memory_space<vmem>>, vector<1x1x80x4xf32>
    %94 = vector.shape_cast %93 : vector<1x1x80x4xf32> to vector<80x4xf32>
    %c15 = arith.constant 15 : index
    %c0_107 = arith.constant 0 : index
    %c0_108 = arith.constant 0 : index
    %95 = vector.load %arg5[%c15, %c0_107, %c0_108] : memref<27x4x32xf32, #tpu.memory_space<vmem>>, vector<1x4x32xf32>
    %96 = vector.shape_cast %95 : vector<1x4x32xf32> to vector<4x32xf32>
    %cst_109 = arith.constant dense<0.000000e+00> : vector<80x32xf32>
    %97 = tpu.matmul %94, %96, %cst_109 {dimension_numbers = #tpu.dot_dimension_numbers<[1], [0], [0], [1], [0, 0, 1, 1], [], []>} : vector<80x4xf32>, vector<4x32xf32>, vector<80x32xf32> -> vector<80x32xf32>
    %98 = arith.addf %92, %97 : vector<80x32xf32>
    %c0_110 = arith.constant 0 : index
    %c0_111 = arith.constant 0 : index
    %c21_112 = arith.constant 21 : index
    %c0_113 = arith.constant 0 : index
    %99 = vector.load %arg3[%c0_110, %c0_111, %c21_112, %c0_113] : memref<1x1x110x4xf32, #tpu.memory_space<vmem>>, vector<1x1x80x4xf32>
    %100 = vector.shape_cast %99 : vector<1x1x80x4xf32> to vector<80x4xf32>
    %c16 = arith.constant 16 : index
    %c0_114 = arith.constant 0 : index
    %c0_115 = arith.constant 0 : index
    %101 = vector.load %arg5[%c16, %c0_114, %c0_115] : memref<27x4x32xf32, #tpu.memory_space<vmem>>, vector<1x4x32xf32>
    %102 = vector.shape_cast %101 : vector<1x4x32xf32> to vector<4x32xf32>
    %cst_116 = arith.constant dense<0.000000e+00> : vector<80x32xf32>
    %103 = tpu.matmul %100, %102, %cst_116 {dimension_numbers = #tpu.dot_dimension_numbers<[1], [0], [0], [1], [0, 0, 1, 1], [], []>} : vector<80x4xf32>, vector<4x32xf32>, vector<80x32xf32> -> vector<80x32xf32>
    %104 = arith.addf %98, %103 : vector<80x32xf32>
    %c0_117 = arith.constant 0 : index
    %c0_118 = arith.constant 0 : index
    %c22_119 = arith.constant 22 : index
    %c0_120 = arith.constant 0 : index
    %105 = vector.load %arg3[%c0_117, %c0_118, %c22_119, %c0_120] : memref<1x1x110x4xf32, #tpu.memory_space<vmem>>, vector<1x1x80x4xf32>
    %106 = vector.shape_cast %105 : vector<1x1x80x4xf32> to vector<80x4xf32>
    %c17 = arith.constant 17 : index
    %c0_121 = arith.constant 0 : index
    %c0_122 = arith.constant 0 : index
    %107 = vector.load %arg5[%c17, %c0_121, %c0_122] : memref<27x4x32xf32, #tpu.memory_space<vmem>>, vector<1x4x32xf32>
    %108 = vector.shape_cast %107 : vector<1x4x32xf32> to vector<4x32xf32>
    %cst_123 = arith.constant dense<0.000000e+00> : vector<80x32xf32>
    %109 = tpu.matmul %106, %108, %cst_123 {dimension_numbers = #tpu.dot_dimension_numbers<[1], [0], [0], [1], [0, 0, 1, 1], [], []>} : vector<80x4xf32>, vector<4x32xf32>, vector<80x32xf32> -> vector<80x32xf32>
    %110 = arith.addf %104, %109 : vector<80x32xf32>
    %c0_124 = arith.constant 0 : index
    %c0_125 = arith.constant 0 : index
    %c0_126 = arith.constant 0 : index
    %c0_127 = arith.constant 0 : index
    %111 = vector.load %arg4[%c0_124, %c0_125, %c0_126, %c0_127] : memref<1x1x110x4xf32, #tpu.memory_space<vmem>>, vector<1x1x80x4xf32>
    %112 = vector.shape_cast %111 : vector<1x1x80x4xf32> to vector<80x4xf32>
    %c18 = arith.constant 18 : index
    %c0_128 = arith.constant 0 : index
    %c0_129 = arith.constant 0 : index
    %113 = vector.load %arg5[%c18, %c0_128, %c0_129] : memref<27x4x32xf32, #tpu.memory_space<vmem>>, vector<1x4x32xf32>
    %114 = vector.shape_cast %113 : vector<1x4x32xf32> to vector<4x32xf32>
    %cst_130 = arith.constant dense<0.000000e+00> : vector<80x32xf32>
    %115 = tpu.matmul %112, %114, %cst_130 {dimension_numbers = #tpu.dot_dimension_numbers<[1], [0], [0], [1], [0, 0, 1, 1], [], []>} : vector<80x4xf32>, vector<4x32xf32>, vector<80x32xf32> -> vector<80x32xf32>
    %116 = arith.addf %110, %115 : vector<80x32xf32>
    %c0_131 = arith.constant 0 : index
    %c0_132 = arith.constant 0 : index
    %c1_133 = arith.constant 1 : index
    %c0_134 = arith.constant 0 : index
    %117 = vector.load %arg4[%c0_131, %c0_132, %c1_133, %c0_134] : memref<1x1x110x4xf32, #tpu.memory_space<vmem>>, vector<1x1x80x4xf32>
    %118 = vector.shape_cast %117 : vector<1x1x80x4xf32> to vector<80x4xf32>
    %c19 = arith.constant 19 : index
    %c0_135 = arith.constant 0 : index
    %c0_136 = arith.constant 0 : index
    %119 = vector.load %arg5[%c19, %c0_135, %c0_136] : memref<27x4x32xf32, #tpu.memory_space<vmem>>, vector<1x4x32xf32>
    %120 = vector.shape_cast %119 : vector<1x4x32xf32> to vector<4x32xf32>
    %cst_137 = arith.constant dense<0.000000e+00> : vector<80x32xf32>
    %121 = tpu.matmul %118, %120, %cst_137 {dimension_numbers = #tpu.dot_dimension_numbers<[1], [0], [0], [1], [0, 0, 1, 1], [], []>} : vector<80x4xf32>, vector<4x32xf32>, vector<80x32xf32> -> vector<80x32xf32>
    %122 = arith.addf %116, %121 : vector<80x32xf32>
    %c0_138 = arith.constant 0 : index
    %c0_139 = arith.constant 0 : index
    %c2_140 = arith.constant 2 : index
    %c0_141 = arith.constant 0 : index
    %123 = vector.load %arg4[%c0_138, %c0_139, %c2_140, %c0_141] : memref<1x1x110x4xf32, #tpu.memory_space<vmem>>, vector<1x1x80x4xf32>
    %124 = vector.shape_cast %123 : vector<1x1x80x4xf32> to vector<80x4xf32>
    %c20_142 = arith.constant 20 : index
    %c0_143 = arith.constant 0 : index
    %c0_144 = arith.constant 0 : index
    %125 = vector.load %arg5[%c20_142, %c0_143, %c0_144] : memref<27x4x32xf32, #tpu.memory_space<vmem>>, vector<1x4x32xf32>
    %126 = vector.shape_cast %125 : vector<1x4x32xf32> to vector<4x32xf32>
    %cst_145 = arith.constant dense<0.000000e+00> : vector<80x32xf32>
    %127 = tpu.matmul %124, %126, %cst_145 {dimension_numbers = #tpu.dot_dimension_numbers<[1], [0], [0], [1], [0, 0, 1, 1], [], []>} : vector<80x4xf32>, vector<4x32xf32>, vector<80x32xf32> -> vector<80x32xf32>
    %128 = arith.addf %122, %127 : vector<80x32xf32>
    %c0_146 = arith.constant 0 : index
    %c0_147 = arith.constant 0 : index
    %c10_148 = arith.constant 10 : index
    %c0_149 = arith.constant 0 : index
    %129 = vector.load %arg4[%c0_146, %c0_147, %c10_148, %c0_149] : memref<1x1x110x4xf32, #tpu.memory_space<vmem>>, vector<1x1x80x4xf32>
    %130 = vector.shape_cast %129 : vector<1x1x80x4xf32> to vector<80x4xf32>
    %c21_150 = arith.constant 21 : index
    %c0_151 = arith.constant 0 : index
    %c0_152 = arith.constant 0 : index
    %131 = vector.load %arg5[%c21_150, %c0_151, %c0_152] : memref<27x4x32xf32, #tpu.memory_space<vmem>>, vector<1x4x32xf32>
    %132 = vector.shape_cast %131 : vector<1x4x32xf32> to vector<4x32xf32>
    %cst_153 = arith.constant dense<0.000000e+00> : vector<80x32xf32>
    %133 = tpu.matmul %130, %132, %cst_153 {dimension_numbers = #tpu.dot_dimension_numbers<[1], [0], [0], [1], [0, 0, 1, 1], [], []>} : vector<80x4xf32>, vector<4x32xf32>, vector<80x32xf32> -> vector<80x32xf32>
    %134 = arith.addf %128, %133 : vector<80x32xf32>
    %c0_154 = arith.constant 0 : index
    %c0_155 = arith.constant 0 : index
    %c11_156 = arith.constant 11 : index
    %c0_157 = arith.constant 0 : index
    %135 = vector.load %arg4[%c0_154, %c0_155, %c11_156, %c0_157] : memref<1x1x110x4xf32, #tpu.memory_space<vmem>>, vector<1x1x80x4xf32>
    %136 = vector.shape_cast %135 : vector<1x1x80x4xf32> to vector<80x4xf32>
    %c22_158 = arith.constant 22 : index
    %c0_159 = arith.constant 0 : index
    %c0_160 = arith.constant 0 : index
    %137 = vector.load %arg5[%c22_158, %c0_159, %c0_160] : memref<27x4x32xf32, #tpu.memory_space<vmem>>, vector<1x4x32xf32>
    %138 = vector.shape_cast %137 : vector<1x4x32xf32> to vector<4x32xf32>
    %cst_161 = arith.constant dense<0.000000e+00> : vector<80x32xf32>
    %139 = tpu.matmul %136, %138, %cst_161 {dimension_numbers = #tpu.dot_dimension_numbers<[1], [0], [0], [1], [0, 0, 1, 1], [], []>} : vector<80x4xf32>, vector<4x32xf32>, vector<80x32xf32> -> vector<80x32xf32>
    %140 = arith.addf %134, %139 : vector<80x32xf32>
    %c0_162 = arith.constant 0 : index
    %c0_163 = arith.constant 0 : index
    %c12_164 = arith.constant 12 : index
    %c0_165 = arith.constant 0 : index
    %141 = vector.load %arg4[%c0_162, %c0_163, %c12_164, %c0_165] : memref<1x1x110x4xf32, #tpu.memory_space<vmem>>, vector<1x1x80x4xf32>
    %142 = vector.shape_cast %141 : vector<1x1x80x4xf32> to vector<80x4xf32>
    %c23 = arith.constant 23 : index
    %c0_166 = arith.constant 0 : index
    %c0_167 = arith.constant 0 : index
    %143 = vector.load %arg5[%c23, %c0_166, %c0_167] : memref<27x4x32xf32, #tpu.memory_space<vmem>>, vector<1x4x32xf32>
    %144 = vector.shape_cast %143 : vector<1x4x32xf32> to vector<4x32xf32>
    %cst_168 = arith.constant dense<0.000000e+00> : vector<80x32xf32>
    %145 = tpu.matmul %142, %144, %cst_168 {dimension_numbers = #tpu.dot_dimension_numbers<[1], [0], [0], [1], [0, 0, 1, 1], [], []>} : vector<80x4xf32>, vector<4x32xf32>, vector<80x32xf32> -> vector<80x32xf32>
    %146 = arith.addf %140, %145 : vector<80x32xf32>
    %c0_169 = arith.constant 0 : index
    %c0_170 = arith.constant 0 : index
    %c20_171 = arith.constant 20 : index
    %c0_172 = arith.constant 0 : index
    %147 = vector.load %arg4[%c0_169, %c0_170, %c20_171, %c0_172] : memref<1x1x110x4xf32, #tpu.memory_space<vmem>>, vector<1x1x80x4xf32>
    %148 = vector.shape_cast %147 : vector<1x1x80x4xf32> to vector<80x4xf32>
    %c24 = arith.constant 24 : index
    %c0_173 = arith.constant 0 : index
    %c0_174 = arith.constant 0 : index
    %149 = vector.load %arg5[%c24, %c0_173, %c0_174] : memref<27x4x32xf32, #tpu.memory_space<vmem>>, vector<1x4x32xf32>
    %150 = vector.shape_cast %149 : vector<1x4x32xf32> to vector<4x32xf32>
    %cst_175 = arith.constant dense<0.000000e+00> : vector<80x32xf32>
    %151 = tpu.matmul %148, %150, %cst_175 {dimension_numbers = #tpu.dot_dimension_numbers<[1], [0], [0], [1], [0, 0, 1, 1], [], []>} : vector<80x4xf32>, vector<4x32xf32>, vector<80x32xf32> -> vector<80x32xf32>
    %152 = arith.addf %146, %151 : vector<80x32xf32>
    %c0_176 = arith.constant 0 : index
    %c0_177 = arith.constant 0 : index
    %c21_178 = arith.constant 21 : index
    %c0_179 = arith.constant 0 : index
    %153 = vector.load %arg4[%c0_176, %c0_177, %c21_178, %c0_179] : memref<1x1x110x4xf32, #tpu.memory_space<vmem>>, vector<1x1x80x4xf32>
    %154 = vector.shape_cast %153 : vector<1x1x80x4xf32> to vector<80x4xf32>
    %c25 = arith.constant 25 : index
    %c0_180 = arith.constant 0 : index
    %c0_181 = arith.constant 0 : index
    %155 = vector.load %arg5[%c25, %c0_180, %c0_181] : memref<27x4x32xf32, #tpu.memory_space<vmem>>, vector<1x4x32xf32>
    %156 = vector.shape_cast %155 : vector<1x4x32xf32> to vector<4x32xf32>
    %cst_182 = arith.constant dense<0.000000e+00> : vector<80x32xf32>
    %157 = tpu.matmul %154, %156, %cst_182 {dimension_numbers = #tpu.dot_dimension_numbers<[1], [0], [0], [1], [0, 0, 1, 1], [], []>} : vector<80x4xf32>, vector<4x32xf32>, vector<80x32xf32> -> vector<80x32xf32>
    %158 = arith.addf %152, %157 : vector<80x32xf32>
    %c0_183 = arith.constant 0 : index
    %c0_184 = arith.constant 0 : index
    %c22_185 = arith.constant 22 : index
    %c0_186 = arith.constant 0 : index
    %159 = vector.load %arg4[%c0_183, %c0_184, %c22_185, %c0_186] : memref<1x1x110x4xf32, #tpu.memory_space<vmem>>, vector<1x1x80x4xf32>
    %160 = vector.shape_cast %159 : vector<1x1x80x4xf32> to vector<80x4xf32>
    %c26 = arith.constant 26 : index
    %c0_187 = arith.constant 0 : index
    %c0_188 = arith.constant 0 : index
    %161 = vector.load %arg5[%c26, %c0_187, %c0_188] : memref<27x4x32xf32, #tpu.memory_space<vmem>>, vector<1x4x32xf32>
    %162 = vector.shape_cast %161 : vector<1x4x32xf32> to vector<4x32xf32>
    %cst_189 = arith.constant dense<0.000000e+00> : vector<80x32xf32>
    %163 = tpu.matmul %160, %162, %cst_189 {dimension_numbers = #tpu.dot_dimension_numbers<[1], [0], [0], [1], [0, 0, 1, 1], [], []>} : vector<80x4xf32>, vector<4x32xf32>, vector<80x32xf32> -> vector<80x32xf32>
    %164 = arith.addf %158, %163 : vector<80x32xf32>
    %c0_190 = arith.constant 0 : index
    %c0_191 = arith.constant 0 : index
    %c0_192 = arith.constant 0 : index
    %c0_193 = arith.constant 0 : index
    %165 = vector.load %arg7[%c0_190, %c0_191, %c0_192, %c0_193] : memref<1x1x80x32xf32, #tpu.memory_space<vmem>>, vector<1x1x80x32xf32>
    %166 = vector.shape_cast %165 : vector<1x1x80x32xf32> to vector<80x32xf32>
    %167 = vector.shape_cast %164 : vector<80x32xf32> to vector<1x1x80x32xf32>
    tpu.vector_store %arg7[%c0_190, %c0_191, %c0_192, %c0_193], %167 {strides = array<i32>} : memref<1x1x80x32xf32, #tpu.memory_space<vmem>>, vector<1x1x80x32xf32>,
    return
  }
  func.func @transform_0(%arg0: i32, %arg1: i32) -> (i32, i32, i32, i32) {
    %c4_i32 = arith.constant 4 : i32
    %0 = arith.addi %arg1, %c4_i32 : i32
    %c-1_i32 = arith.constant -1 : i32
    %1 = arith.addi %0, %c-1_i32 : i32
    %c4_i32_0 = arith.constant 4 : i32
    %c0_i32 = arith.constant 0 : i32
    %2 = arith.cmpi eq, %c4_i32_0, %c0_i32 : i32
    %c1_i32 = arith.constant 1 : i32
    %3 = arith.select %2, %c1_i32, %c4_i32_0 : i32
    %4 = arith.remsi %1, %3 : i32
    %c0_i32_1 = arith.constant 0 : i32
    %5 = arith.cmpi ne, %4, %c0_i32_1 : i32
    %c0_i32_2 = arith.constant 0 : i32
    %6 = arith.cmpi slt, %4, %c0_i32_2 : i32
    %c0_i32_3 = arith.constant 0 : i32
    %7 = arith.cmpi slt, %3, %c0_i32_3 : i32
    %8 = arith.xori %6, %7 : i1
    %9 = arith.andi %8, %5 : i1
    %10 = arith.addi %4, %3 : i32
    %11 = arith.select %9, %10, %4 : i32
    %c0_i32_4 = arith.constant 0 : i32
    %c0_i32_5 = arith.constant 0 : i32
    %c0_i32_6 = arith.constant 0 : i32
    return %arg0, %11, %c0_i32_4, %c0_i32_5 : i32, i32, i32, i32
  }
  func.func @transform_1(%arg0: i32, %arg1: i32) -> (i32, i32, i32, i32) {
    %c4_i32 = arith.constant 4 : i32
    %0 = arith.addi %arg1, %c4_i32 : i32
    %c0_i32 = arith.constant 0 : i32
    %1 = arith.addi %0, %c0_i32 : i32
    %c4_i32_0 = arith.constant 4 : i32
    %c0_i32_1 = arith.constant 0 : i32
    %2 = arith.cmpi eq, %c4_i32_0, %c0_i32_1 : i32
    %c1_i32 = arith.constant 1 : i32
    %3 = arith.select %2, %c1_i32, %c4_i32_0 : i32
    %4 = arith.remsi %1, %3 : i32
    %c0_i32_2 = arith.constant 0 : i32
    %5 = arith.cmpi ne, %4, %c0_i32_2 : i32
    %c0_i32_3 = arith.constant 0 : i32
    %6 = arith.cmpi slt, %4, %c0_i32_3 : i32
    %c0_i32_4 = arith.constant 0 : i32
    %7 = arith.cmpi slt, %3, %c0_i32_4 : i32
    %8 = arith.xori %6, %7 : i1
    %9 = arith.andi %8, %5 : i1
    %10 = arith.addi %4, %3 : i32
    %11 = arith.select %9, %10, %4 : i32
    %c0_i32_5 = arith.constant 0 : i32
    %c0_i32_6 = arith.constant 0 : i32
    %c0_i32_7 = arith.constant 0 : i32
    return %arg0, %11, %c0_i32_5, %c0_i32_6 : i32, i32, i32, i32
  }
  func.func @transform_2(%arg0: i32, %arg1: i32) -> (i32, i32, i32, i32) {
    %c4_i32 = arith.constant 4 : i32
    %0 = arith.addi %arg1, %c4_i32 : i32
    %c1_i32 = arith.constant 1 : i32
    %1 = arith.addi %0, %c1_i32 : i32
    %c4_i32_0 = arith.constant 4 : i32
    %c0_i32 = arith.constant 0 : i32
    %2 = arith.cmpi eq, %c4_i32_0, %c0_i32 : i32
    %c1_i32_1 = arith.constant 1 : i32
    %3 = arith.select %2, %c1_i32_1, %c4_i32_0 : i32
    %4 = arith.remsi %1, %3 : i32
    %c0_i32_2 = arith.constant 0 : i32
    %5 = arith.cmpi ne, %4, %c0_i32_2 : i32
    %c0_i32_3 = arith.constant 0 : i32
    %6 = arith.cmpi slt, %4, %c0_i32_3 : i32
    %c0_i32_4 = arith.constant 0 : i32
    %7 = arith.cmpi slt, %3, %c0_i32_4 : i32
    %8 = arith.xori %6, %7 : i1
    %9 = arith.andi %8, %5 : i1
    %10 = arith.addi %4, %3 : i32
    %11 = arith.select %9, %10, %4 : i32
    %c0_i32_5 = arith.constant 0 : i32
    %c0_i32_6 = arith.constant 0 : i32
    %c0_i32_7 = arith.constant 0 : i32
    return %arg0, %11, %c0_i32_5, %c0_i32_6 : i32, i32, i32, i32
  }
  func.func @transform_3(%arg0: i32, %arg1: i32) -> (i32, i32, i32) {
    %c0_i32 = arith.constant 0 : i32
    %c0_i32_0 = arith.constant 0 : i32
    %c0_i32_1 = arith.constant 0 : i32
    %c0_i32_2 = arith.constant 0 : i32
    return %c0_i32, %c0_i32_0, %c0_i32_1 : i32, i32, i32
  }
  func.func @transform_4(%arg0: i32, %arg1: i32) -> (i32, i32) {
    %c0_i32 = arith.constant 0 : i32
    %c0_i32_0 = arith.constant 0 : i32
    %c0_i32_1 = arith.constant 0 : i32
    return %c0_i32, %c0_i32_0 : i32, i32
  }
  func.func @transform_5(%arg0: i32, %arg1: i32) -> (i32, i32, i32, i32) {
    %c0_i32 = arith.constant 0 : i32
    %c0_i32_0 = arith.constant 0 : i32
    %c0_i32_1 = arith.constant 0 : i32
    return %arg0, %arg1, %c0_i32, %c0_i32_0 : i32, i32, i32, i32
  }
}

</mosaic_0001>

<bundles_post_ra>
// kernel: tile.8
= control target key start
LH: loop header
LB: loop body
LE: loop exit
PB: predicated region body
PF: predicated region fallthrough
CT: control target
= control target key end

     0   :  { %2 = vsyncpa [#allocation1], 0  ;;  %s44_s6 = smov [#allocation0]   ;;  %s70_s0 = inlined_call_operand.hbm [shape: f32[4], index: 0, kind: input, shape index: {}]   ;;  %s71_s1 = inlined_call_operand.vmem [shape: f32[8,4], index: 1, kind: output, shape index: {}]  }
   0x1   :  { %s9_s7 = sshll.u32 %s44_s6, 4  ;;  %s20_s10 = scalar_lea.hbm %s70_s0, 16  ;;  %s10_s7 = int_to_ptr.vmem [resolvable:$true] %s9_s7 }
   0x2   :  { %p21_p0 = scmp.ne.s32.totalorder %s70_s0, %s20_s10  ;;  %p24_p1 = scmp.lt.u32.totalorder %s20_s10, %s70_s0 }
   0x4   :  { %p26_p2 = pnand %p24_p1, %p21_p0 }
   0x6   :  { %29 = shalt.err (!%p26_p2)
}
   0x7   :  { %s30_s15 = scalar_lea.vmem %s10_s7, 16  ;;  %s34_s16 = scalar_lea.vmem %s10_s7, 32 }
   0x8   :  { %p31_p3 = scmp.ne.s32.totalorder %s10_s7, %s30_s15  ;;  %p35_p4 = scmp.lt.s32.totalorder %s10_s7, %s10_s7 }
   0x9   :  { %p36_p5 = scmp.lt.s32.totalorder %s34_s16, %s30_s15 }
   0xb   :  { %p37_p6 = por %p36_p5, %p35_p4 }
   0xd   :  { %p38_p7 = pnand %p37_p6, %p31_p3 }
   0xf   :  { %41 = shalt.err (!%p38_p7)
}
  0x10   :  { %12 = dma.hbm_to_vmem [thread:$0]  %s70_s0, 16, %s10_s7, [#allocation1]  }
  0x11   :  { %42 = dma.done.wait [#allocation1], 16  }
  0x12   :  { %43 = vsyncadd [#allocation1], 4294967280  ;;  %v16_v0 = vld [vmem:[#allocation0] ss:$0 sm:$0xff] }
  0x13   :  { %17 = vst [vmem:[%s71_s1] sm:$0xff] %v16_v0 }
  0x14   :  { %18 = vsyncpa [#allocation1], 1 }

// kernel: tile.9
= control target key start
LH: loop header
LB: loop body
LE: loop exit
PB: predicated region body
PF: predicated region fallthrough
CT: control target
= control target key end

     0   :  { %s67_s10 = smov 28   ;;  %s68_s11 = smov 20   ;;  %vm3_vm0 = vcmask 31744   ;;  %vm9_vm1 = vcmask 261344   ;;  %vm15_vm2 = vcmask 228544   ;;  %vm21_vm3 = vcmask 195744   ;;  %s111_s0 = inlined_call_operand.vmem [shape: f32[8,4], index: 0, kind: input, shape index: {}]   ;;  %s112_s1 = inlined_call_operand.vmem [shape: f32[1,32], index: 1, kind: output, shape index: {}]  }
   0x1   :  { %v53_v0 = vld [vmem:[%s111_s0 + $0x7] sm:$0x1]   ;;  %v55_v1 = vld [vmem:[%s111_s0 + $0x5] sm:$0x1]   ;;  %v54_v2 = vld [vmem:[%s111_s0 + $0x6] sm:$0x1]  }
   0x2   :  { %7 = vrot.lane.b32.xlu0 %v53_v0, %s67_s10  ;;  %19 = vrot.lane.b32.xlu1 %v55_v1, %s68_s11  ;;  %v56_v3 = vld [vmem:[%s111_s0 + $0x4] sm:$0x1]   ;;  %v2_v4 = vld [vmem:[%s111_s0] sm:$0x1]   ;;  %s69_s18 = smov 24   ;;  %s70_s19 = smov 16  }
   0x3   :  { %4 = vst.msk [vmem:[#allocation0] sm:$0x1] %vm3_vm0, %v2_v4   ;;  %v57_v5 = vld [vmem:[%s111_s0 + $0x3] sm:$0x1]   ;;  %v58_v6 = vld [vmem:[%s111_s0 + $0x2] sm:$0x1]  }
   0x4   :  { %s71_s24 = smov 12   ;;  %s72_s25 = smov 8   ;;  %v59_v7 = vld [vmem:[%s111_s0 + $0x1] sm:$0x1]   ;;  %vm27_vm4 = vcmask 162944   ;;  %vm33_vm5 = vcmask 130144  }
   0x5   :  { %s73_s0 = smov 4   ;;  %vm39_vm6 = vcmask 97344   ;;  %vm45_vm7 = vcmask 64544  }
   0x6   :  { %13 = vrot.lane.b32.xlu0 %v54_v2, %s69_s18  ;;  %25 = vrot.lane.b32.xlu1 %v56_v3, %s70_s19 }
   0xa   :  { %31 = vrot.lane.b32.xlu0 %v57_v5, %s71_s24  ;;  %37 = vrot.lane.b32.xlu1 %v58_v6, %s72_s25 }
   0xe   :  { %43 = vrot.lane.b32.xlu0 %v59_v7, %s73_s0 }
  0x74   :  { %v8_v8 = vpop.permute.xlu0 %7   ;;  %v20_v9 = vpop.permute.xlu1 %19  }
  0x75   :  { %10 = vst.msk [vmem:[#allocation0] sm:$0x1] %vm9_vm1, %v8_v8  }
  0x78   :  { %v14_v10 = vpop.permute.xlu0 %13   ;;  %v26_v11 = vpop.permute.xlu1 %25  }
  0x79   :  { %16 = vst.msk [vmem:[#allocation0] sm:$0x1] %vm15_vm2, %v14_v10  }
  0x7a   :  { %22 = vst.msk [vmem:[#allocation0] sm:$0x1] %vm21_vm3, %v20_v9  }
  0x7b   :  { %28 = vst.msk [vmem:[#allocation0] sm:$0x1] %vm27_vm4, %v26_v11  }
  0x7c   :  { %v32_v12 = vpop.permute.xlu0 %31   ;;  %v38_v13 = vpop.permute.xlu1 %37  }
  0x7d   :  { %34 = vst.msk [vmem:[#allocation0] sm:$0x1] %vm33_vm5, %v32_v12  }
  0x7e   :  { %40 = vst.msk [vmem:[#allocation0] sm:$0x1] %vm39_vm6, %v38_v13  }
  0x80   :  { %v44_v14 = vpop.permute.xlu0 %43  }
  0x81   :  { %46 = vst.msk [vmem:[#allocation0] sm:$0x1] %vm45_vm7, %v44_v14  }
  0x88   :  { %v50_v15 = vld [vmem:[#allocation0] sm:$0x1] }
  0x89   :  { %52 = vst [vmem:[%s112_s1] sm:$0x1] %v50_v15 }

// kernel: upsample3d_forward.1
= control target key start
LH: loop header
LB: loop body
LE: loop exit
PB: predicated region body
PF: predicated region fallthrough
CT: control target
= control target key end

     0   :  { %s6855_s18 = smov 0   ;;  %s6857_s19 = smov 0   ;;  %s7598_s0 = inlined_call_operand.vmem [shape: f32[2,4,110,4], index: 0, kind: input, shape index: {}, may-alias: {0,1,2}]   ;;  %s7599_s1 = inlined_call_operand.vmem [shape: f32[2,4,110,4], index: 1, kind: input, shape index: {}, may-alias: {0,1,2}]   ;;  %s7600_s2 = inlined_call_operand.vmem [shape: f32[2,4,110,4], index: 2, kind: input, shape index: {}, may-alias: {0,1,2}]   ;;  %s7601_s3 = inlined_call_operand.vmem [shape: f32[27,4,32], index: 3, kind: input, shape index: {}]   ;;  %s7602_s4 = inlined_call_operand.vmem [shape: f32[1,32], index: 4, kind: input, shape index: {}]   ;;  %s7603_s5 = inlined_call_operand.vmem [shape: f32[2,4,80,32], index: 5, kind: output, shape index: {}]  }
   0x1   :  { %s6859_s20 = smov 0   ;;  %s6861_s21 = smov 0  }
   0x2   :  { %s6863_s22 = smov 0  }
   0x3 LB: > { %s24_s23 = sadd.s32 1, %s6815_s20  ;;  %s27_s24 = sadd.s32 1, %s6819_s21  ;;  %s6823_s22 = sphi %s6863_s22, %s15_s22   ;;  %s6819_s21 = sphi %s6861_s21, %s7607_s21   ;;  %s6815_s20 = sphi %s6859_s20, %s7606_s20   ;;  %s6811_s19 = sphi %s6857_s19, %s7605_s19   ;;  %s6807_s18 = sphi %s6855_s18, %s7604_s18  }
   0x4   : > { %p25_p0 = scmp.ge.s32.totalorder %s24_s23, 4  ;;  %p5370_p1 = scmp.ge.s32.totalorder %s6823_s22, 1 }
   0x5   : > { %p395_p2 = scmp.lt.s32.totalorder %s6823_s22, 9 }
   0x6   : > { %s7609_s23 = smov (%p25_p0, %s24_s23), 0  ;;  %s7611_s24 = smov (!%p25_p0, %s27_s24), %s6819_s21 }
   0x7   : > { %p396_p3 = pnand %p5370_p1, %p395_p2  ;;  %p29_p4 = scmp.ge.s32.totalorder %s7611_s24, 2 }
   0x8   : > { %vm651_vm0 = vcmask (!%p396_p3), 1043456   ;;  %v5540_v0 = vld [vmem:[%s7601_s3 + $0x34] sm:$0xf] (!%p396_p3)  ;;  %v619_v1 = vld [vmem:[%s7601_s3] sm:$0xf] (!%p396_p3)  ;;  %s488_s29 = sadd.s32 (!%p396_p3), 3, %s6807_s18 }
   0x9   : > { %s7613_s24 = smov (%p29_p4, %s7611_s24), 0  ;;  %399 = sbr.rel (%p396_p3) target bundleno = 517 (0x205), region = 40 }
   0xa   : > { %6228 = vmatprep.subr.msk.mxu0 (!%p396_p3), %vm651_vm0, %v5540_v0  ;;  %6007 = vmatprep.subr.msk.mxu1 (!%p396_p3), %vm651_vm0, %v619_v1  ;;  %p489_p5 = scmp.lt.s32.totalorder (!%p396_p3), %s488_s29, 0  ;;  %s490_s30 = ssub.s32 (!%p396_p3), 0, %s488_s29  ;;  %v6901_v2 = vld [vmem:[%s7601_s3 + $0x38] sm:$0xf] (!%p396_p3)  ;;  %v5396_v3 = vld [vmem:[%s7601_s3 + $0x4] sm:$0xf] (!%p396_p3) }
   0xb   : > { %6229 = vmatpush3.msk.msra.mxu0 (!%p396_p3), %vm651_vm0, %v5540_v0  ;;  %6008 = vmatpush3.msk.msra.mxu1 (!%p396_p3), %vm651_vm0, %v619_v1  ;;  %s5371_s8 = smin.u32 (!%p396_p3), %s490_s30, %s488_s29  ;;  %p501_p6 = scmp.lt.s32.totalorder (!%p396_p3), %s6811_s19, 1  ;;  %vm620_vm1 = vcmask (!%p396_p3), 31744   ;;  %v5408_v7 = vld [vmem:[%s7601_s3 + $0x8] sm:$0xf] (!%p396_p3)  ;;  %v5564_v15 = vld [vmem:[%s7601_s3 + $0x3c] sm:$0xf] (!%p396_p3) }
   0xc   : > { %s492_s11 = sand.u32 (!%p396_p3), 3, %s5371_s8   ;;  %6245 = vmatprep.subr.msk.mxu0 (!%p396_p3), %vm651_vm0, %v6901_v2  ;;  %6024 = vmatprep.subr.msk.mxu1 (!%p396_p3), %vm651_vm0, %v5396_v3  ;;  %s523_s13 = sadd.s32 (!%p396_p3), 4, %s6807_s18  ;;  %v5420_v27 = vld [vmem:[%s7601_s3 + $0xc] sm:$0xf] (!%p396_p3)  ;;  %v5576_v30 = vld [vmem:[%s7601_s3 + $0x40] sm:$0xf] (!%p396_p3) }
   0xd   : > { %s493_s12 = ssub.s32 (!%p396_p3), 0, %s492_s11  ;;  %s525_s15 = ssub.s32 (!%p396_p3), 0, %s523_s13  ;;  %v5432_v47 = vld [vmem:[%s7601_s3 + $0x10] sm:$0xf] (!%p396_p3)  ;;  %v5588_v49 = vld [vmem:[%s7601_s3 + $0x44] sm:$0xf] (!%p396_p3) }
   0xe   : > { %p524_p8 = scmp.lt.s32.totalorder (!%p396_p3), %s523_s13, 0  ;;  %s5375_s16 = smin.u32 (!%p396_p3), %s525_s15, %s523_s13  ;;  %v5444_v59 = vld [vmem:[%s7601_s3 + $0x14] sm:$0xf] (!%p396_p3)  ;;  %v5600_v61 = vld [vmem:[%s7601_s3 + $0x48] sm:$0xf] (!%p396_p3)  ;;  %vm5200_vm2 = vcmask (!%p396_p3), 261120  }
   0xf   : > { %s527_s17 = sand.u32 (!%p396_p3), 3, %s5375_s16   ;;  %p595_p1 = scmp.lt.s32.totalorder (!%p396_p3), %s6807_s18, 3 }
  0x10   : > { %s7615_s12 = smov (!%p489_p5, %s493_s12), %s492_s11  ;;  %s7617_s19 = smov (!%p501_p6, %s6811_s19), 1 }
  0x11   : > { %p5373_p7 = scmp.lt.s32.totalorder %s7615_s12, 0  ;;  %s499_s14 = sadd.s32 4, %s7615_s12 }
  0x12   : > { %s6917_s25 = smul.u32 56, %s7617_s19  ;;  %s528_s26 = ssub.s32 0, %s527_s17 }
  0x13   : > { %s7619_s14 = smov (!%p5373_p7, %s499_s14), %s7615_s12  ;;  %s7623_s26 = smov (!%p524_p8, %s528_s26), %s527_s17 }
  0x14   : > { %p503_p9 = scmp.lt.s32.totalorder %s7619_s14, 3  ;;  %p5377_p10 = scmp.lt.s32.totalorder %s7623_s26, 0 }
  0x15   : > { %s534_s29 = sadd.s32 4, %s7623_s26 }
  0x16   : > { %s7621_s14 = smov (!%p503_p9, %s7619_s14), 3  ;;  %s7625_s29 = smov (!%p5377_p10, %s534_s29), %s7623_s26 }
  0x17   : > { %s6738_s27 = smul.u32 14, %s7621_s14  ;;  %p538_p11 = scmp.lt.s32.totalorder %s7625_s29, 3 }
  0x19   : > { %s507_s28 = sadd.s32 %s6917_s25, %s6738_s27  ;;  %s7627_s29 = smov (!%p538_p11, %s7625_s29), 3 }
  0x1a   : > { %s5374_s30 = sshll.u32 %s507_s28, 3  ;;  %s6740_s11 = smul.u32 14, %s7627_s29 }
  0x1b   : > { %s6923_s8 = scalar_lea.vmem %s7598_s0, %s5374_s30 }
  0x1c   : > { %v609_v4 = vld [vmem:[%s6923_s8] sm:$0xff]  ;;  %v610_v5 = vld [vmem:[%s6923_s8 + $0x8] sm:$0xff]  ;;  %v611_v6 = vld [vmem:[%s6923_s8 + $0x10] sm:$0xff]  ;;  %s542_s12 = sadd.s32 %s6740_s11, %s6917_s25  ;;  %s7053_s11 = sadd.s32 5, %s6807_s18 }
  0x1d   : > { %6009 = vmatprep.mubr.msk.f32.mxu1 %vm620_vm1, %v609_v4  ;;  %v612_v8 = vld [vmem:[%s6923_s8 + $0x18] sm:$0xff]  ;;  %v613_v9 = vld [vmem:[%s6923_s8 + $0x20] sm:$0xff]  ;;  %v614_v10 = vld [vmem:[%s6923_s8 + $0x28] sm:$0xff]  ;;  %s5378_s13 = sshll.u32 %s542_s12, 3  ;;  %s560_s12 = ssub.s32 0, %s7053_s11 }
  0x1e   : > { %6010 = vmatmul.mubr.msk.f32.vlgmr.msra.gmra.mrb[0].mxu1 %vm620_vm1, %v610_v5  ;;  %v615_v11 = vld [vmem:[%s6923_s8 + $0x30] sm:$0xff]  ;;  %s6946_s16 = scalar_lea.vmem %s7599_s1, %s5378_s13  ;;  %v616_v16 = vld [vmem:[%s6923_s8 + $0x38] sm:$0xff]  ;;  %v617_v17 = vld [vmem:[%s6923_s8 + $0x40] sm:$0xff]  ;;  %s5379_s13 = smin.u32 %s560_s12, %s7053_s11 }
  0x1f   : > { %6025 = vmatpush3.msk.msra.mxu1 %vm651_vm0, %v5396_v3  ;;  %6012 = vmatprep.mubr.msk.f32.mxu1 %vm620_vm1, %v611_v6  ;;  %v2820_v12 = vld [vmem:[%s6946_s16 + $0xb] sm:$0xff]  ;;  %v2821_v13 = vld [vmem:[%s6946_s16 + $0x13] sm:$0xff]  ;;  %v2822_v14 = vld [vmem:[%s6946_s16 + $0x1b] sm:$0xff]  ;;  %s562_s14 = sand.u32 3, %s5379_s13   ;;  %p559_p12 = scmp.lt.s32.totalorder %s7053_s11, 0 }
  0x20   : > { %6041 = vmatprep.subr.msk.mxu1 %vm651_vm0, %v5408_v7  ;;  %6230 = vmatprep.mubr.msk.f32.mxu0 %vm620_vm1, %v2820_v12  ;;  %v2823_v18 = vld [vmem:[%s6946_s16 + $0x23] sm:$0xff]  ;;  %v2824_v19 = vld [vmem:[%s6946_s16 + $0x2b] sm:$0xff]  ;;  %v2825_v22 = vld [vmem:[%s6946_s16 + $0x33] sm:$0xff]  ;;  %s563_s26 = ssub.s32 0, %s562_s14  ;;  %s7635_s18 = smov (!%p595_p1, %s6807_s18), 3 }
  0x21   : > { %6231 = vmatmul.mubr.msk.f32.vlgmr.msra.gmra.mrb[0].mxu0 %vm620_vm1, %v2821_v13  ;;  %v618_v20 = vld [vmem:[%s6923_s8 + $0x48] sm:$0xff]  ;;  %v782_v25 = vld [vmem:[%s6923_s8 + $0x11] sm:$0xff]  ;;  %v2992_v28 = vld [vmem:[%s6946_s16 + $0x1c] sm:$0xff]  ;;  %s7629_s26 = smov (!%p559_p12, %s563_s26), %s562_s14 }
  0x22   : > { %6013 = vmatmul.mubr.msk.f32.gmra.mrb[2].mxu1 %vm620_vm1, %v612_v8  ;;  %6246 = vmatpush3.msk.msra.mxu0 %vm651_vm0, %v6901_v2  ;;  %v780_v21 = vld [vmem:[%s6923_s8 + $0x1] sm:$0xff]  ;;  %v2990_v23 = vld [vmem:[%s6946_s16 + $0xc] sm:$0xff]  ;;  %v2991_v26 = vld [vmem:[%s6946_s16 + $0x14] sm:$0xff]  ;;  %p5381_p13 = scmp.lt.s32.totalorder %s7629_s26, 0  ;;  %s569_s29 = sadd.s32 4, %s7629_s26 }
  0x23   : > { %6015 = vmatprep.mubr.msk.f32.mxu1 %vm620_vm1, %v613_v9  ;;  %6233 = vmatprep.mubr.msk.f32.mxu0 %vm620_vm1, %v2822_v14  ;;  %v781_v24 = vld [vmem:[%s6923_s8 + $0x9] sm:$0xff]  ;;  %v783_v29 = vld [vmem:[%s6923_s8 + $0x19] sm:$0xff]  ;;  %v784_v31 = vld [vmem:[%s6923_s8 + $0x21] sm:$0xff] }
  0x24   : > { %6262 = vmatprep.subr.msk.mxu0 %vm651_vm0, %v5564_v15  ;;  %v2993_v32 = vld [vmem:[%s6946_s16 + $0x24] sm:$0xff]  ;;  %v2994_v33 = vld [vmem:[%s6946_s16 + $0x2c] sm:$0xff]  ;;  %v2995_v36 = vld [vmem:[%s6946_s16 + $0x34] sm:$0xff]  ;;  %s7631_s29 = smov (!%p5381_p13, %s569_s29), %s7629_s26 }
  0x25   : > { %6234 = vmatmul.mubr.msk.f32.gmra.mrb[2].mxu0 %vm620_vm1, %v2823_v18  ;;  %v785_v34 = vld [vmem:[%s6923_s8 + $0x29] sm:$0xff]  ;;  %v786_v35 = vld [vmem:[%s6923_s8 + $0x31] sm:$0xff]  ;;  %v2996_v37 = vld [vmem:[%s6946_s16 + $0x3c] sm:$0xff]  ;;  %p573_p0 = scmp.lt.s32.totalorder %s7631_s29, 3 }
  0x26   : > { %6016 = vmatmul.mubr.msk.f32.gmra.mrb[4].mxu1 %vm620_vm1, %v614_v10  ;;  %6236 = vmatprep.mubr.msk.f32.mxu0 %vm620_vm1, %v2824_v19  ;;  %v787_v38 = vld [vmem:[%s6923_s8 + $0x39] sm:$0xff]  ;;  %v788_v39 = vld [vmem:[%s6923_s8 + $0x41] sm:$0xff]  ;;  %v2998_v41 = vld [vmem:[%s6946_s16 + $0x4c] sm:$0xff] }
  0x27   : > { %6018 = vmatprep.mubr.msk.f32.mxu1 %vm620_vm1, %v615_v11  ;;  %v2997_v40 = vld [vmem:[%s6946_s16 + $0x44] sm:$0xff]  ;;  %v2999_v44 = vld [vmem:[%s6946_s16 + $0x54] sm:$0xff]  ;;  %v3169_v56 = vld [vmem:[%s6946_s16 + $0x5c] sm:$0xff]  ;;  %s7633_s29 = smov (!%p573_p0, %s7631_s29), 3 }
  0x28   : > { %v789_v42 = vld [vmem:[%s6923_s8 + $0x49] sm:$0xff]  ;;  %v952_v46 = vld [vmem:[%s6923_s8 + $0x12] sm:$0xff]  ;;  %v953_v48 = vld [vmem:[%s6923_s8 + $0x1a] sm:$0xff]  ;;  %s6741_s10 = smul.u32 14, %s7633_s29 }
  0x29   : > { %6237 = vmatmul.mubr.msk.f32.gmra.mrb[4].mxu0 %vm620_vm1, %v2825_v22  ;;  %v950_v43 = vld [vmem:[%s6923_s8 + $0x2] sm:$0xff]  ;;  %v951_v45 = vld [vmem:[%s6923_s8 + $0xa] sm:$0xff]  ;;  %v956_v52 = vld [vmem:[%s6923_s8 + $0x32] sm:$0xff] }
  0x2a   : > { %6019 = vmatmul.mubr.msk.f32.gmra.mrb[6].mxu1 %vm620_vm1, %v616_v16  ;;  %6247 = vmatprep.mubr.msk.f32.mxu0 %vm620_vm1, %v2990_v23  ;;  %v954_v50 = vld [vmem:[%s6923_s8 + $0x22] sm:$0xff]  ;;  %v955_v51 = vld [vmem:[%s6923_s8 + $0x2a] sm:$0xff]  ;;  %v957_v53 = vld [vmem:[%s6923_s8 + $0x3a] sm:$0xff]  ;;  %s577_s11 = sadd.s32 %s6741_s10, %s6917_s25 }
  0x2b   : > { %6021 = vmatprep.mubr.msk.f32.mxu1 %vm620_vm1, %v617_v17  ;;  %v958_v54 = vld [vmem:[%s6923_s8 + $0x42] sm:$0xff]  ;;  %v959_v55 = vld [vmem:[%s6923_s8 + $0x4a] sm:$0xff]  ;;  %v3330_v57 = vld [vmem:[%s6946_s16 + $0x15] sm:$0xff]  ;;  %s5382_s12 = sshll.u32 %s577_s11, 3 }
  0x2c   : > { %v3331_v58 = vld [vmem:[%s6946_s16 + $0x1d] sm:$0xff]  ;;  %v3332_v60 = vld [vmem:[%s6946_s16 + $0x25] sm:$0xff]  ;;  %v3333_v62 = vld [vmem:[%s6946_s16 + $0x2d] sm:$0xff]  ;;  %s7159_s14 = scalar_lea.vmem %s7600_s2, %s5382_s12  ;;  %s6742_s12 = smul.u32 10, %s7635_s18 }
  0x2d   : > { %6248 = vmatmul.mubr.msk.f32.vlgmr.msra.gmra.mrb[0].mxu0 %vm620_vm1, %v2991_v26  ;;  %v3334_v63 = vld [vmem:[%s6946_s16 + $0x35] sm:$0xff]  ;;  %v3335_v0 = vld [vmem:[%s6946_s16 + $0x3d] sm:$0xff]  ;;  %v3336_v1 = vld [vmem:[%s6946_s16 + $0x45] sm:$0xff] }
  0x2e   : > { %6022 = vmatmul.mubr.msk.f32.gmra.mrb[8].mxu1 %vm620_vm1, %v618_v20  ;;  %6263 = vmatpush3.msk.msra.mxu0 %vm651_vm0, %v5564_v15  ;;  %v3337_v2 = vld [vmem:[%s6946_s16 + $0x4d] sm:$0xff]  ;;  %v3338_v3 = vld [vmem:[%s6946_s16 + $0x55] sm:$0xff]  ;;  %v3339_v6 = vld [vmem:[%s6946_s16 + $0x5d] sm:$0xff] }
  0x2f   : > { %6026 = vmatprep.mubr.msk.f32.mxu1 %vm620_vm1, %v780_v21  ;;  %6250 = vmatprep.mubr.msk.f32.mxu0 %vm620_vm1, %v2992_v28  ;;  %v1129_v4 = vld [vmem:[%s6923_s8 + $0x52] sm:$0xff]  ;;  %v1292_v9 = vld [vmem:[%s6923_s8 + $0x1b] sm:$0xff]  ;;  %v3502_v12 = vld [vmem:[%s6946_s16 + $0x26] sm:$0xff] }
  0x30   : > { %6279 = vmatprep.subr.msk.mxu0 %vm651_vm0, %v5576_v30  ;;  %v1290_v5 = vld [vmem:[%s6923_s8 + $0xb] sm:$0xff]  ;;  %v1291_v8 = vld [vmem:[%s6923_s8 + $0x13] sm:$0xff]  ;;  %v3501_v10 = vld [vmem:[%s6946_s16 + $0x1e] sm:$0xff] }
  0x31   : > { %6251 = vmatmul.mubr.msk.f32.gmra.mrb[2].mxu0 %vm620_vm1, %v2993_v32  ;;  %v5456_v11 = vld [vmem:[%s7601_s3 + $0x18] sm:$0xf]  ;;  %v1293_v13 = vld [vmem:[%s6923_s8 + $0x23] sm:$0xff]  ;;  %v5612_v14 = vld [vmem:[%s7601_s3 + $0x4c] sm:$0xf] }
  0x32   : > { %6027 = vmatmul.mubr.msk.f32.vlgmr.msra.gmra.mrb[0].mxu1 %vm620_vm1, %v781_v24  ;;  %6253 = vmatprep.mubr.msk.f32.mxu0 %vm620_vm1, %v2994_v33  ;;  %v1294_v15 = vld [vmem:[%s6923_s8 + $0x2b] sm:$0xff]  ;;  %v3504_v17 = vld [vmem:[%s6946_s16 + $0x36] sm:$0xff]  ;;  %v3505_v20 = vld [vmem:[%s6946_s16 + $0x3e] sm:$0xff] }
  0x33   : > { %6042 = vmatpush3.msk.msra.mxu1 %vm651_vm0, %v5408_v7  ;;  %6029 = vmatprep.mubr.msk.f32.mxu1 %vm620_vm1, %v782_v25  ;;  %v3500_v7 = vld [vmem:[%s6946_s16 + $0x16] sm:$0xff]  ;;  %v3503_v16 = vld [vmem:[%s6946_s16 + $0x2e] sm:$0xff]  ;;  %v3506_v21 = vld [vmem:[%s6946_s16 + $0x46] sm:$0xff] }
  0x34   : > { %6058 = vmatprep.subr.msk.mxu1 %vm651_vm0, %v5420_v27  ;;  %v1295_v18 = vld [vmem:[%s6923_s8 + $0x33] sm:$0xff]  ;;  %v1296_v19 = vld [vmem:[%s6923_s8 + $0x3b] sm:$0xff]  ;;  %v1297_v22 = vld [vmem:[%s6923_s8 + $0x43] sm:$0xff] }
  0x35   : > { %6254 = vmatmul.mubr.msk.f32.gmra.mrb[4].mxu0 %vm620_vm1, %v2995_v36  ;;  %v1298_v23 = vld [vmem:[%s6923_s8 + $0x4b] sm:$0xff]  ;;  %v3508_v25 = vld [vmem:[%s6946_s16 + $0x56] sm:$0xff] }
  0x36   : > { %6030 = vmatmul.mubr.msk.f32.gmra.mrb[2].mxu1 %vm620_vm1, %v783_v29  ;;  %6256 = vmatprep.mubr.msk.f32.mxu0 %vm620_vm1, %v2996_v37  ;;  %v3507_v24 = vld [vmem:[%s6946_s16 + $0x4e] sm:$0xff]  ;;  %v3670_v29 = vld [vmem:[%s7159_s14] sm:$0xff] }
  0x37   : > { %6032 = vmatprep.mubr.msk.f32.mxu1 %vm620_vm1, %v784_v31  ;;  %v1462_v31 = vld [vmem:[%s6923_s8 + $0x1c] sm:$0xff] }
  0x39   : > { %6257 = vmatmul.mubr.msk.f32.gmra.mrb[6].mxu0 %vm620_vm1, %v2997_v40 }
  0x3a   : > { %6033 = vmatmul.mubr.msk.f32.gmra.mrb[4].mxu1 %vm620_vm1, %v785_v34  ;;  %6259 = vmatprep.mubr.msk.f32.mxu0 %vm620_vm1, %v2998_v41  ;;  %v3672_v34 = vld [vmem:[%s7159_s14 + $0x10] sm:$0xff] }
  0x3b   : > { %6035 = vmatprep.mubr.msk.f32.mxu1 %vm620_vm1, %v786_v35  ;;  %v1463_v35 = vld [vmem:[%s6923_s8 + $0x24] sm:$0xff] }
  0x3d   : > { %6260 = vmatmul.mubr.msk.f32.gmra.mrb[8].mxu0 %vm620_vm1, %v2999_v44 }
  0x3e   : > { %6036 = vmatmul.mubr.msk.f32.gmra.mrb[6].mxu1 %vm620_vm1, %v787_v38  ;;  %6264 = vmatprep.mubr.msk.f32.mxu0 %vm620_vm1, %v2991_v26  ;;  %v1299_v26 = vld [vmem:[%s6923_s8 + $0x53] sm:$0xff] }
  0x3f   : > { %6038 = vmatprep.mubr.msk.f32.mxu1 %vm620_vm1, %v788_v39  ;;  %v3673_v38 = vld [vmem:[%s7159_s14 + $0x18] sm:$0xff]  ;;  %v3674_v39 = vld [vmem:[%s7159_s14 + $0x20] sm:$0xff] }
  0x41   : > { %6265 = vmatmul.mubr.msk.f32.vlgmr.msra.gmra.mrb[0].mxu0 %vm620_vm1, %v2992_v28  ;;  %v3509_v28 = vld [vmem:[%s6946_s16 + $0x5e] sm:$0xff] }
  0x42   : > { %6039 = vmatmul.mubr.msk.f32.gmra.mrb[8].mxu1 %vm620_vm1, %v789_v42  ;;  %6280 = vmatpush3.msk.msra.mxu0 %vm651_vm0, %v5576_v30  ;;  %v1461_v30 = vld [vmem:[%s6923_s8 + $0x14] sm:$0xff]  ;;  %v3675_v42 = vld [vmem:[%s7159_s14 + $0x28] sm:$0xff] }
  0x43   : > { %6043 = vmatprep.mubr.msk.f32.mxu1 %vm620_vm1, %v950_v43  ;;  %6267 = vmatprep.mubr.msk.f32.mxu0 %vm620_vm1, %v2993_v32  ;;  %v3671_v32 = vld [vmem:[%s7159_s14 + $0x8] sm:$0xff]  ;;  %v3676_v43 = vld [vmem:[%s7159_s14 + $0x30] sm:$0xff] }
  0x44   : > { %6296 = vmatprep.subr.msk.mxu0 %vm651_vm0, %v5588_v49 }
  0x45   : > { %6268 = vmatmul.mubr.msk.f32.gmra.mrb[2].mxu0 %vm620_vm1, %v2994_v33  ;;  %v5468_v33 = vld [vmem:[%s7601_s3 + $0x1c] sm:$0xf] }
  0x46   : > { %6044 = vmatmul.mubr.msk.f32.vlgmr.msra.gmra.mrb[0].mxu1 %vm620_vm1, %v951_v45  ;;  %6270 = vmatprep.mubr.msk.f32.mxu0 %vm620_vm1, %v2995_v36  ;;  %v5624_v36 = vld [vmem:[%s7601_s3 + $0x50] sm:$0xf] }
  0x47   : > { %6059 = vmatpush3.msk.msra.mxu1 %vm651_vm0, %v5420_v27  ;;  %6046 = vmatprep.mubr.msk.f32.mxu1 %vm620_vm1, %v952_v46  ;;  %v1460_v27 = vld [vmem:[%s6923_s8 + $0xc] sm:$0xff] }
  0x48   : > { %6075 = vmatprep.subr.msk.mxu1 %vm651_vm0, %v5432_v47 }
  0x49   : > { %6271 = vmatmul.mubr.msk.f32.gmra.mrb[4].mxu0 %vm620_vm1, %v2996_v37  ;;  %v1464_v37 = vld [vmem:[%s6923_s8 + $0x2c] sm:$0xff] }
  0x4a   : > { %6047 = vmatmul.mubr.msk.f32.gmra.mrb[2].mxu1 %vm620_vm1, %v953_v48  ;;  %6273 = vmatprep.mubr.msk.f32.mxu0 %vm620_vm1, %v2997_v40  ;;  %v1465_v40 = vld [vmem:[%s6923_s8 + $0x34] sm:$0xff] }
  0x4b   : > { %6049 = vmatprep.mubr.msk.f32.mxu1 %vm620_vm1, %v954_v50 }
  0x4d   : > { %6274 = vmatmul.mubr.msk.f32.gmra.mrb[6].mxu0 %vm620_vm1, %v2998_v41  ;;  %v1466_v41 = vld [vmem:[%s6923_s8 + $0x3c] sm:$0xff] }
  0x4e   : > { %6050 = vmatmul.mubr.msk.f32.gmra.mrb[4].mxu1 %vm620_vm1, %v955_v51  ;;  %6276 = vmatprep.mubr.msk.f32.mxu0 %vm620_vm1, %v2999_v44  ;;  %v1467_v44 = vld [vmem:[%s6923_s8 + $0x44] sm:$0xff] }
  0x4f   : > { %6052 = vmatprep.mubr.msk.f32.mxu1 %vm620_vm1, %v956_v52 }
  0x51   : > { %6277 = vmatmul.mubr.msk.f32.gmra.mrb[8].mxu0 %vm620_vm1, %v3169_v56  ;;  %v3844_v56 = vld [vmem:[%s7159_s14 + $0x21] sm:$0xff] }
  0x52   : > { %6053 = vmatmul.mubr.msk.f32.gmra.mrb[6].mxu1 %vm620_vm1, %v957_v53  ;;  %6281 = vmatprep.mubr.msk.f32.mxu0 %vm620_vm1, %v3330_v57  ;;  %v3845_v57 = vld [vmem:[%s7159_s14 + $0x29] sm:$0xff] }
  0x53   : > { %6055 = vmatprep.mubr.msk.f32.mxu1 %vm620_vm1, %v958_v54 }
  0x55   : > { %6282 = vmatmul.mubr.msk.f32.vlgmr.msra.gmra.mrb[0].mxu0 %vm620_vm1, %v3331_v58  ;;  %v3846_v58 = vld [vmem:[%s7159_s14 + $0x31] sm:$0xff] }
  0x56   : > { %6056 = vmatmul.mubr.msk.f32.gmra.mrb[8].mxu1 %vm620_vm1, %v959_v55  ;;  %6297 = vmatpush3.msk.msra.mxu0 %vm651_vm0, %v5588_v49  ;;  %v3679_v49 = vld [vmem:[%s7159_s14 + $0x48] sm:$0xff] }
  0x57   : > { %6060 = vmatprep.mubr.msk.f32.mxu1 %vm620_vm1, %v951_v45  ;;  %6284 = vmatprep.mubr.msk.f32.mxu0 %vm620_vm1, %v3332_v60  ;;  %v1468_v45 = vld [vmem:[%s6923_s8 + $0x4c] sm:$0xff]  ;;  %v3848_v60 = vld [vmem:[%s7159_s14 + $0x41] sm:$0xff] }
  0x58   : > { %6313 = vmatprep.subr.msk.mxu0 %vm651_vm0, %v5600_v61 }
  0x59   : > { %6285 = vmatmul.mubr.msk.f32.gmra.mrb[2].mxu0 %vm620_vm1, %v3333_v62  ;;  %v1800_v62 = vld [vmem:[%s6923_s8 + $0x15] sm:$0xff] }
  0x5a   : > { %6061 = vmatmul.mubr.msk.f32.vlgmr.msra.gmra.mrb[0].mxu1 %vm620_vm1, %v952_v46  ;;  %6287 = vmatprep.mubr.msk.f32.mxu0 %vm620_vm1, %v3334_v63  ;;  %v3677_v46 = vld [vmem:[%s7159_s14 + $0x38] sm:$0xff]  ;;  %v3849_v63 = vld [vmem:[%s7159_s14 + $0x49] sm:$0xff] }
  0x5b   : > { %6076 = vmatpush3.msk.msra.mxu1 %vm651_vm0, %v5432_v47  ;;  %6063 = vmatprep.mubr.msk.f32.mxu1 %vm620_vm1, %v953_v48  ;;  %v3678_v47 = vld [vmem:[%s7159_s14 + $0x40] sm:$0xff]  ;;  %v1469_v48 = vld [vmem:[%s6923_s8 + $0x54] sm:$0xff] }
  0x5c   : > { %6092 = vmatprep.subr.msk.mxu1 %vm651_vm0, %v5444_v59 }
  0x5d   : > { %6288 = vmatmul.mubr.msk.f32.gmra.mrb[4].mxu0 %vm620_vm1, %v3335_v0  ;;  %v4010_v0 = vld [vmem:[%s7159_s14 + $0x2] sm:$0xff] }
  0x5e   : > { %6064 = vmatmul.mubr.msk.f32.gmra.mrb[2].mxu1 %vm620_vm1, %v954_v50  ;;  %6290 = vmatprep.mubr.msk.f32.mxu0 %vm620_vm1, %v3336_v1  ;;  %v3840_v50 = vld [vmem:[%s7159_s14 + $0x1] sm:$0xff] }
  0x5f   : > { %6066 = vmatprep.mubr.msk.f32.mxu1 %vm620_vm1, %v955_v51  ;;  %v3841_v51 = vld [vmem:[%s7159_s14 + $0x9] sm:$0xff]  ;;  %v1801_v1 = vld [vmem:[%s6923_s8 + $0x1d] sm:$0xff] }
  0x61   : > { %6291 = vmatmul.mubr.msk.f32.gmra.mrb[6].mxu0 %vm620_vm1, %v3337_v2  ;;  %v1802_v2 = vld [vmem:[%s6923_s8 + $0x25] sm:$0xff] }
  0x62   : > { %6067 = vmatmul.mubr.msk.f32.gmra.mrb[4].mxu1 %vm620_vm1, %v956_v52  ;;  %6293 = vmatprep.mubr.msk.f32.mxu0 %vm620_vm1, %v3338_v3  ;;  %v5480_v52 = vld [vmem:[%s7601_s3 + $0x20] sm:$0xf]  ;;  %v4011_v3 = vld [vmem:[%s7159_s14 + $0xa] sm:$0xff] }
  0x63   : > { %6069 = vmatprep.mubr.msk.f32.mxu1 %vm620_vm1, %v957_v53  ;;  %v3842_v53 = vld [vmem:[%s7159_s14 + $0x11] sm:$0xff] }
  0x65   : > { %6294 = vmatmul.mubr.msk.f32.gmra.mrb[8].mxu0 %vm620_vm1, %v3339_v6  ;;  %v1803_v6 = vld [vmem:[%s6923_s8 + $0x2d] sm:$0xff] }
  0x66   : > { %6070 = vmatmul.mubr.msk.f32.gmra.mrb[6].mxu1 %vm620_vm1, %v958_v54  ;;  %6298 = vmatprep.mubr.msk.f32.mxu0 %vm620_vm1, %v3500_v7  ;;  %v5636_v54 = vld [vmem:[%s7601_s3 + $0x54] sm:$0xf]  ;;  %v5648_v7 = vld [vmem:[%s7601_s3 + $0x58] sm:$0xf] }
  0x67   : > { %6072 = vmatprep.mubr.msk.f32.mxu1 %vm620_vm1, %v959_v55  ;;  %v3843_v55 = vld [vmem:[%s7159_s14 + $0x19] sm:$0xff] }
  0x69   : > { %6299 = vmatmul.mubr.msk.f32.vlgmr.msra.gmra.mrb[0].mxu0 %vm620_vm1, %v3501_v10  ;;  %v4014_v10 = vld [vmem:[%s7159_s14 + $0x22] sm:$0xff] }
  0x6a   : > { %6073 = vmatmul.mubr.msk.f32.gmra.mrb[8].mxu1 %vm620_vm1, %v1129_v4  ;;  %6314 = vmatpush3.msk.msra.mxu0 %vm651_vm0, %v5600_v61  ;;  %v1639_v61 = vld [vmem:[%s6923_s8 + $0x5c] sm:$0xff]  ;;  %v5492_v4 = vld [vmem:[%s7601_s3 + $0x24] sm:$0xf] }
  0x6b   : > { %6077 = vmatprep.mubr.msk.f32.mxu1 %vm620_vm1, %v1290_v5  ;;  %6301 = vmatprep.mubr.msk.f32.mxu0 %vm620_vm1, %v3502_v12  ;;  %v4012_v5 = vld [vmem:[%s7159_s14 + $0x12] sm:$0xff]  ;;  %v1806_v12 = vld [vmem:[%s6923_s8 + $0x45] sm:$0xff] }
  0x6c   : > { %6330 = vmatprep.subr.msk.mxu0 %vm651_vm0, %v5612_v14 }
  0x6d   : > { %6302 = vmatmul.mubr.msk.f32.gmra.mrb[2].mxu0 %vm620_vm1, %v3503_v16  ;;  %v1808_v16 = vld [vmem:[%s6923_s8 + $0x55] sm:$0xff] }
  0x6e   : > { %6078 = vmatmul.mubr.msk.f32.vlgmr.msra.gmra.mrb[0].mxu1 %vm620_vm1, %v1291_v8  ;;  %6304 = vmatprep.mubr.msk.f32.mxu0 %vm620_vm1, %v3504_v17  ;;  %v1804_v8 = vld [vmem:[%s6923_s8 + $0x35] sm:$0xff] }
  0x6f   : > { %6093 = vmatpush3.msk.msra.mxu1 %vm651_vm0, %v5444_v59  ;;  %6080 = vmatprep.mubr.msk.f32.mxu1 %vm620_vm1, %v1292_v9  ;;  %v3847_v59 = vld [vmem:[%s7159_s14 + $0x39] sm:$0xff] }
  0x70   : > { %6109 = vmatprep.subr.msk.mxu1 %vm651_vm0, %v5456_v11  ;;  %v4013_v9 = vld [vmem:[%s7159_s14 + $0x1a] sm:$0xff] }
  0x71   : > { %6305 = vmatmul.mubr.msk.f32.gmra.mrb[4].mxu0 %vm620_vm1, %v3505_v20  ;;  %v4017_v17 = vld [vmem:[%s7159_s14 + $0x3a] sm:$0xff] }
  0x72   : > { %6081 = vmatmul.mubr.msk.f32.gmra.mrb[2].mxu1 %vm620_vm1, %v1293_v13  ;;  %6307 = vmatprep.mubr.msk.f32.mxu0 %vm620_vm1, %v3506_v21  ;;  %v4015_v13 = vld [vmem:[%s7159_s14 + $0x2a] sm:$0xff]  ;;  %v1970_v20 = vld [vmem:[%s6923_s8 + $0x16] sm:$0xff] }
  0x73   : > { %6083 = vmatprep.mubr.msk.f32.mxu1 %vm620_vm1, %v1294_v15  ;;  %v1807_v15 = vld [vmem:[%s6923_s8 + $0x4d] sm:$0xff] }
  0x74   : > { %v4019_v21 = vld [vmem:[%s7159_s14 + $0x4a] sm:$0xff] }
  0x75   : > { %6308 = vmatmul.mubr.msk.f32.gmra.mrb[6].mxu0 %vm620_vm1, %v3507_v24  ;;  %v5504_v24 = vld [vmem:[%s7601_s3 + $0x28] sm:$0xf] }
  0x76   : > { %6084 = vmatmul.mubr.msk.f32.gmra.mrb[4].mxu1 %vm620_vm1, %v1295_v18  ;;  %6310 = vmatprep.mubr.msk.f32.mxu0 %vm620_vm1, %v3508_v25  ;;  %v4018_v18 = vld [vmem:[%s7159_s14 + $0x42] sm:$0xff]  ;;  %v1973_v25 = vld [vmem:[%s6923_s8 + $0x2e] sm:$0xff] }
  0x77   : > { %6086 = vmatprep.mubr.msk.f32.mxu1 %vm620_vm1, %v1296_v19  ;;  %v1809_v19 = vld [vmem:[%s6923_s8 + $0x5d] sm:$0xff] }
  0x79   : > { %6311 = vmatmul.mubr.msk.f32.gmra.mrb[8].mxu0 %vm620_vm1, %v3509_v28  ;;  %v1975_v28 = vld [vmem:[%s6923_s8 + $0x3e] sm:$0xff] }
  0x7a   : > { %6087 = vmatmul.mubr.msk.f32.gmra.mrb[6].mxu1 %vm620_vm1, %v1297_v22  ;;  %6315 = vmatprep.mubr.msk.f32.mxu0 %vm620_vm1, %v3670_v29  ;;  %v1971_v22 = vld [vmem:[%s6923_s8 + $0x1e] sm:$0xff]  ;;  %v1976_v29 = vld [vmem:[%s6923_s8 + $0x46] sm:$0xff] }
  0x7b   : > { %6089 = vmatprep.mubr.msk.f32.mxu1 %vm620_vm1, %v1298_v23  ;;  %v1972_v23 = vld [vmem:[%s6923_s8 + $0x26] sm:$0xff] }
  0x7d   : > { %6316 = vmatmul.mubr.msk.f32.vlgmr.msra.gmra.mrb[0].mxu0 %vm620_vm1, %v3671_v32  ;;  %v1979_v32 = vld [vmem:[%s6923_s8 + $0x5e] sm:$0xff] }
  0x7e   : > { %6090 = vmatmul.mubr.msk.f32.gmra.mrb[8].mxu1 %vm620_vm1, %v1299_v26  ;;  %6331 = vmatpush3.msk.msra.mxu0 %vm651_vm0, %v5612_v14  ;;  %v4016_v14 = vld [vmem:[%s7159_s14 + $0x32] sm:$0xff]  ;;  %v5660_v26 = vld [vmem:[%s7601_s3 + $0x5c] sm:$0xf] }
  0x7f   : > { %6094 = vmatprep.mubr.msk.f32.mxu1 %vm620_vm1, %v1460_v27  ;;  %6318 = vmatprep.mubr.msk.f32.mxu0 %vm620_vm1, %v3672_v34  ;;  %v1974_v27 = vld [vmem:[%s6923_s8 + $0x36] sm:$0xff] }
  0x80   : > { %6347 = vmatprep.subr.msk.mxu0 %vm651_vm0, %v5624_v36  ;;  %v4189_v34 = vld [vmem:[%s7159_s14 + $0x52] sm:$0xff] }
  0x81   : > { %6319 = vmatmul.mubr.msk.f32.gmra.mrb[2].mxu0 %vm620_vm1, %v3673_v38  ;;  %v4351_v38 = vld [vmem:[%s7159_s14 + $0x13] sm:$0xff] }
  0x82   : > { %6095 = vmatmul.mubr.msk.f32.vlgmr.msra.gmra.mrb[0].mxu1 %vm620_vm1, %v1461_v30  ;;  %6321 = vmatprep.mubr.msk.f32.mxu0 %vm620_vm1, %v3674_v39  ;;  %v5516_v39 = vld [vmem:[%s7601_s3 + $0x2c] sm:$0xf] }
  0x83   : > { %6110 = vmatpush3.msk.msra.mxu1 %vm651_vm0, %v5456_v11  ;;  %6097 = vmatprep.mubr.msk.f32.mxu1 %vm620_vm1, %v1462_v31  ;;  %v1805_v11 = vld [vmem:[%s6923_s8 + $0x3d] sm:$0xff] }
  0x84   : > { %6126 = vmatprep.subr.msk.mxu1 %vm651_vm0, %v5468_v33 }
  0x85   : > { %6322 = vmatmul.mubr.msk.f32.gmra.mrb[4].mxu0 %vm620_vm1, %v3675_v42  ;;  %v5672_v42 = vld [vmem:[%s7601_s3 + $0x60] sm:$0xf] }
  0x86   : > { %6098 = vmatmul.mubr.msk.f32.gmra.mrb[2].mxu1 %vm620_vm1, %v1463_v35  ;;  %6324 = vmatprep.mubr.msk.f32.mxu0 %vm620_vm1, %v3676_v43  ;;  %v2144_v43 = vld [vmem:[%s6946_s16 + $0x20] sm:$0xff] }
  0x87   : > { %6100 = vmatprep.mubr.msk.f32.mxu1 %vm620_vm1, %v1464_v37 }
  0x89   : > { %6325 = vmatmul.mubr.msk.f32.gmra.mrb[6].mxu0 %vm620_vm1, %v3677_v46  ;;  %v2145_v46 = vld [vmem:[%s6946_s16 + $0x28] sm:$0xff] }
  0x8a   : > { %6101 = vmatmul.mubr.msk.f32.gmra.mrb[4].mxu1 %vm620_vm1, %v1465_v40  ;;  %6327 = vmatprep.mubr.msk.f32.mxu0 %vm620_vm1, %v3678_v47  ;;  %v2146_v47 = vld [vmem:[%s6946_s16 + $0x30] sm:$0xff] }
  0x8b   : > { %6103 = vmatprep.mubr.msk.f32.mxu1 %vm620_vm1, %v1466_v41 }
  0x8d   : > { %6328 = vmatmul.mubr.msk.f32.gmra.mrb[8].mxu0 %vm620_vm1, %v3679_v49  ;;  %v4356_v49 = vld [vmem:[%s7159_s14 + $0x3b] sm:$0xff] }
  0x8e   : > { %6104 = vmatmul.mubr.msk.f32.gmra.mrb[6].mxu1 %vm620_vm1, %v1467_v44  ;;  %6332 = vmatprep.mubr.msk.f32.mxu0 %vm620_vm1, %v3840_v50  ;;  %v2147_v50 = vld [vmem:[%s6946_s16 + $0x38] sm:$0xff] }
  0x8f   : > { %6106 = vmatprep.mubr.msk.f32.mxu1 %vm620_vm1, %v1468_v45 }
  0x91   : > { %6333 = vmatmul.mubr.msk.f32.vlgmr.msra.gmra.mrb[0].mxu0 %vm620_vm1, %v3841_v51  ;;  %v2148_v51 = vld [vmem:[%s6946_s16 + $0x40] sm:$0xff] }
  0x92   : > { %6107 = vmatmul.mubr.msk.f32.gmra.mrb[8].mxu1 %vm620_vm1, %v1469_v48  ;;  %6348 = vmatpush3.msk.msra.mxu0 %vm651_vm0, %v5624_v36  ;;  %v2141_v36 = vld [vmem:[%s6946_s16 + $0x8] sm:$0xff] }
  0x93   : > { %6111 = vmatprep.mubr.msk.f32.mxu1 %vm620_vm1, %v1461_v30  ;;  %6335 = vmatprep.mubr.msk.f32.mxu0 %vm620_vm1, %v3842_v53  ;;  %v1977_v30 = vld [vmem:[%s6923_s8 + $0x4e] sm:$0xff] }
  0x94   : > { %6364 = vmatprep.subr.msk.mxu0 %vm651_vm0, %v5636_v54  ;;  %v4358_v53 = vld [vmem:[%s7159_s14 + $0x4b] sm:$0xff] }
  0x95   : > { %6336 = vmatmul.mubr.msk.f32.gmra.mrb[2].mxu0 %vm620_vm1, %v3843_v55  ;;  %v2310_v55 = vld [vmem:[%s6946_s16 + $0x1] sm:$0xff] }
  0x96   : > { %6112 = vmatmul.mubr.msk.f32.vlgmr.msra.gmra.mrb[0].mxu1 %vm620_vm1, %v1462_v31  ;;  %6338 = vmatprep.mubr.msk.f32.mxu0 %vm620_vm1, %v3844_v56  ;;  %v1978_v31 = vld [vmem:[%s6923_s8 + $0x56] sm:$0xff] }
  0x97   : > { %6127 = vmatpush3.msk.msra.mxu1 %vm651_vm0, %v5468_v33  ;;  %6114 = vmatprep.mubr.msk.f32.mxu1 %vm620_vm1, %v1463_v35  ;;  %v2140_v33 = vld [vmem:[%s6946_s16] sm:$0xff]  ;;  %v4350_v35 = vld [vmem:[%s7159_s14 + $0xb] sm:$0xff]  ;;  %v4359_v56 = vld [vmem:[%s7159_s14 + $0x53] sm:$0xff] }
  0x98   : > { %6143 = vmatprep.subr.msk.mxu1 %vm651_vm0, %v5480_v52 }
  0x99   : > { %6339 = vmatmul.mubr.msk.f32.gmra.mrb[4].mxu0 %vm620_vm1, %v3845_v57  ;;  %v4520_v57 = vld [vmem:[%s7159_s14 + $0xc] sm:$0xff] }
  0x9a   : > { %6115 = vmatmul.mubr.msk.f32.gmra.mrb[2].mxu1 %vm620_vm1, %v1464_v37  ;;  %6341 = vmatprep.mubr.msk.f32.mxu0 %vm620_vm1, %v3846_v58  ;;  %v2142_v37 = vld [vmem:[%s6946_s16 + $0x10] sm:$0xff] }
  0x9b   : > { %6117 = vmatprep.mubr.msk.f32.mxu1 %vm620_vm1, %v1465_v40  ;;  %v4352_v40 = vld [vmem:[%s7159_s14 + $0x1b] sm:$0xff]  ;;  %v2311_v58 = vld [vmem:[%s6946_s16 + $0x9] sm:$0xff] }
  0x9d   : > { %6342 = vmatmul.mubr.msk.f32.gmra.mrb[6].mxu0 %vm620_vm1, %v3847_v59  ;;  %v2312_v59 = vld [vmem:[%s6946_s16 + $0x11] sm:$0xff] }
  0x9e   : > { %6118 = vmatmul.mubr.msk.f32.gmra.mrb[4].mxu1 %vm620_vm1, %v1466_v41  ;;  %6344 = vmatprep.mubr.msk.f32.mxu0 %vm620_vm1, %v3848_v60  ;;  %v2143_v41 = vld [vmem:[%s6946_s16 + $0x18] sm:$0xff] }
  0x9f   : > { %6120 = vmatprep.mubr.msk.f32.mxu1 %vm620_vm1, %v1467_v44  ;;  %v4353_v44 = vld [vmem:[%s7159_s14 + $0x23] sm:$0xff]  ;;  %v4521_v60 = vld [vmem:[%s7159_s14 + $0x14] sm:$0xff] }
  0xa1   : > { %6345 = vmatmul.mubr.msk.f32.gmra.mrb[8].mxu0 %vm620_vm1, %v3849_v63  ;;  %v2313_v63 = vld [vmem:[%s6946_s16 + $0x19] sm:$0xff] }
  0xa2   : > { %6121 = vmatmul.mubr.msk.f32.gmra.mrb[6].mxu1 %vm620_vm1, %v1468_v45  ;;  %6349 = vmatprep.mubr.msk.f32.mxu0 %vm620_vm1, %v4010_v0  ;;  %v4354_v45 = vld [vmem:[%s7159_s14 + $0x2b] sm:$0xff]  ;;  %v5684_v0 = vld [vmem:[%s7601_s3 + $0x64] sm:$0xf] }
  0xa3   : > { %6123 = vmatprep.mubr.msk.f32.mxu1 %vm620_vm1, %v1469_v48  ;;  %v4355_v48 = vld [vmem:[%s7159_s14 + $0x33] sm:$0xff] }
  0xa5   : > { %6350 = vmatmul.mubr.msk.f32.vlgmr.msra.gmra.mrb[0].mxu0 %vm620_vm1, %v4011_v3 }
  0xa6   : > { %6124 = vmatmul.mubr.msk.f32.gmra.mrb[8].mxu1 %vm620_vm1, %v1639_v61  ;;  %6365 = vmatpush3.msk.msra.mxu0 %vm651_vm0, %v5636_v54  ;;  %v2149_v54 = vld [vmem:[%s6946_s16 + $0x48] sm:$0xff]  ;;  %v5528_v61 = vld [vmem:[%s7601_s3 + $0x30] sm:$0xf] }
  0xa7   : > { %6128 = vmatprep.mubr.msk.f32.mxu1 %vm620_vm1, %v1800_v62  ;;  %6352 = vmatprep.mubr.msk.f32.mxu0 %vm620_vm1, %v4012_v5  ;;  %v4522_v62 = vld [vmem:[%s7159_s14 + $0x1c] sm:$0xff] }
  0xa8   : > { %6381 = vmatprep.subr.msk.mxu0 %vm651_vm0, %v5648_v7 }
  0xa9   : > { %6353 = vmatmul.mubr.msk.f32.gmra.mrb[2].mxu0 %vm620_vm1, %v4013_v9 }
  0xaa   : > { %6129 = vmatmul.mubr.msk.f32.vlgmr.msra.gmra.mrb[0].mxu1 %vm620_vm1, %v1801_v1  ;;  %6355 = vmatprep.mubr.msk.f32.mxu0 %vm620_vm1, %v4014_v10  ;;  %v2314_v1 = vld [vmem:[%s6946_s16 + $0x21] sm:$0xff] }
  0xab   : > { %6144 = vmatpush3.msk.msra.mxu1 %vm651_vm0, %v5480_v52  ;;  %6131 = vmatprep.mubr.msk.f32.mxu1 %vm620_vm1, %v1802_v2  ;;  %v4357_v52 = vld [vmem:[%s7159_s14 + $0x43] sm:$0xff] }
  0xac   : > { %6160 = vmatprep.subr.msk.mxu1 %vm651_vm0, %v5492_v4  ;;  %v4523_v2 = vld [vmem:[%s7159_s14 + $0x24] sm:$0xff] }
  0xad   : > { %6356 = vmatmul.mubr.msk.f32.gmra.mrb[4].mxu0 %vm620_vm1, %v4015_v13 }
  0xae   : > { %6132 = vmatmul.mubr.msk.f32.gmra.mrb[2].mxu1 %vm620_vm1, %v1803_v6  ;;  %6358 = vmatprep.mubr.msk.f32.mxu0 %vm620_vm1, %v4016_v14  ;;  %v4525_v6 = vld [vmem:[%s7159_s14 + $0x34] sm:$0xff] }
  0xaf   : > { %6134 = vmatprep.mubr.msk.f32.mxu1 %vm620_vm1, %v1804_v8  ;;  %v2317_v8 = vld [vmem:[%s6946_s16 + $0x39] sm:$0xff] }
  0xb1   : > { %6359 = vmatmul.mubr.msk.f32.gmra.mrb[6].mxu0 %vm620_vm1, %v4017_v17 }
  0xb2   : > { %6135 = vmatmul.mubr.msk.f32.gmra.mrb[4].mxu1 %vm620_vm1, %v1805_v11  ;;  %6361 = vmatprep.mubr.msk.f32.mxu0 %vm620_vm1, %v4018_v18  ;;  %v4528_v11 = vld [vmem:[%s7159_s14 + $0x4c] sm:$0xff] }
  0xb3   : > { %6137 = vmatprep.mubr.msk.f32.mxu1 %vm620_vm1, %v1806_v12  ;;  %v2319_v12 = vld [vmem:[%s6946_s16 + $0x49] sm:$0xff] }
  0xb5   : > { %6362 = vmatmul.mubr.msk.f32.gmra.mrb[8].mxu0 %vm620_vm1, %v4019_v21 }
  0xb6   : > { %6138 = vmatmul.mubr.msk.f32.gmra.mrb[6].mxu1 %vm620_vm1, %v1807_v15  ;;  %6366 = vmatprep.mubr.msk.f32.mxu0 %vm620_vm1, %v4011_v3  ;;  %v4524_v3 = vld [vmem:[%s7159_s14 + $0x2c] sm:$0xff] }
  0xb7   : > { %6140 = vmatprep.mubr.msk.f32.mxu1 %vm620_vm1, %v1808_v16  ;;  %v2481_v15 = vld [vmem:[%s6946_s16 + $0xa] sm:$0xff]  ;;  %v2482_v16 = vld [vmem:[%s6946_s16 + $0x12] sm:$0xff] }
  0xb9   : > { %6367 = vmatmul.mubr.msk.f32.vlgmr.msra.gmra.mrb[0].mxu0 %vm620_vm1, %v4012_v5  ;;  %v2316_v5 = vld [vmem:[%s6946_s16 + $0x31] sm:$0xff] }
  0xba   : > { %6141 = vmatmul.mubr.msk.f32.gmra.mrb[8].mxu1 %vm620_vm1, %v1809_v19  ;;  %6382 = vmatpush3.msk.msra.mxu0 %vm651_vm0, %v5648_v7  ;;  %v4526_v7 = vld [vmem:[%s7159_s14 + $0x3c] sm:$0xff] }
  0xbb   : > { %6145 = vmatprep.mubr.msk.f32.mxu1 %vm620_vm1, %v1970_v20  ;;  %6369 = vmatprep.mubr.msk.f32.mxu0 %vm620_vm1, %v4013_v9  ;;  %v2318_v9 = vld [vmem:[%s6946_s16 + $0x41] sm:$0xff]  ;;  %v6784_v20 = vld [vmem:[%s7601_s3 + $0x34] sm:$0xf] }
  0xbc   : > { %6398 = vmatprep.subr.msk.mxu0 %vm651_vm0, %v5660_v26  ;;  %v2484_v19 = vld [vmem:[%s6946_s16 + $0x22] sm:$0xff] }
  0xbd   : > { %6370 = vmatmul.mubr.msk.f32.gmra.mrb[2].mxu0 %vm620_vm1, %v4014_v10  ;;  %v4527_v10 = vld [vmem:[%s7159_s14 + $0x44] sm:$0xff] }
  0xbe   : > { %6146 = vmatmul.mubr.msk.f32.vlgmr.msra.gmra.mrb[0].mxu1 %vm620_vm1, %v1971_v22  ;;  %6372 = vmatprep.mubr.msk.f32.mxu0 %vm620_vm1, %v4015_v13  ;;  %v2480_v13 = vld [vmem:[%s6946_s16 + $0x2] sm:$0xff]  ;;  %v2486_v22 = vld [vmem:[%s6946_s16 + $0x32] sm:$0xff] }
  0xbf   : > { %6161 = vmatpush3.msk.msra.mxu1 %vm651_vm0, %v5492_v4  ;;  %6148 = vmatprep.mubr.msk.f32.mxu1 %vm620_vm1, %v1972_v23  ;;  %v2315_v4 = vld [vmem:[%s6946_s16 + $0x29] sm:$0xff]  ;;  %v2487_v23 = vld [vmem:[%s6946_s16 + $0x3a] sm:$0xff] }
  0xc0   : > { %6177 = vmatprep.subr.msk.mxu1 %vm651_vm0, %v5504_v24 }
  0xc1   : > { %6373 = vmatmul.mubr.msk.f32.gmra.mrb[4].mxu0 %vm620_vm1, %v4016_v14  ;;  %v4529_v14 = vld [vmem:[%s7159_s14 + $0x54] sm:$0xff] }
  0xc2   : > { %6149 = vmatmul.mubr.msk.f32.gmra.mrb[2].mxu1 %vm620_vm1, %v1973_v25  ;;  %6375 = vmatprep.mubr.msk.f32.mxu0 %vm620_vm1, %v4017_v17  ;;  %v2483_v17 = vld [vmem:[%s6946_s16 + $0x1a] sm:$0xff]  ;;  %v2489_v25 = vld [vmem:[%s6946_s16 + $0x4a] sm:$0xff] }
  0xc3   : > { %6151 = vmatprep.mubr.msk.f32.mxu1 %vm620_vm1, %v1974_v27  ;;  %v4860_v27 = vld [vmem:[%s7159_s14 + $0x15] sm:$0xff] }
  0xc5   : > { %6376 = vmatmul.mubr.msk.f32.gmra.mrb[6].mxu0 %vm620_vm1, %v4018_v18  ;;  %v5696_v18 = vld [vmem:[%s7601_s3 + $0x68] sm:$0xf] }
  0xc6   : > { %6152 = vmatmul.mubr.msk.f32.gmra.mrb[4].mxu1 %vm620_vm1, %v1975_v28  ;;  %6378 = vmatprep.mubr.msk.f32.mxu0 %vm620_vm1, %v4019_v21  ;;  %v2485_v21 = vld [vmem:[%s6946_s16 + $0x2a] sm:$0xff]  ;;  %v4861_v28 = vld [vmem:[%s7159_s14 + $0x1d] sm:$0xff] }
  0xc7   : > { %6154 = vmatprep.mubr.msk.f32.mxu1 %vm620_vm1, %v1976_v29  ;;  %v4862_v29 = vld [vmem:[%s7159_s14 + $0x25] sm:$0xff] }
  0xc9   : > { %6379 = vmatmul.mubr.msk.f32.gmra.mrb[8].mxu0 %vm620_vm1, %v4189_v34  ;;  %v4867_v34 = vld [vmem:[%s7159_s14 + $0x4d] sm:$0xff] }
  0xca   : > { %6155 = vmatmul.mubr.msk.f32.gmra.mrb[6].mxu1 %vm620_vm1, %v1977_v30  ;;  %6383 = vmatprep.mubr.msk.f32.mxu0 %vm620_vm1, %v4350_v35  ;;  %v4863_v30 = vld [vmem:[%s7159_s14 + $0x2d] sm:$0xff]  ;;  %v4868_v35 = vld [vmem:[%s7159_s14 + $0x55] sm:$0xff] }
  0xcb   : > { %6157 = vmatprep.mubr.msk.f32.mxu1 %vm620_vm1, %v1978_v31  ;;  %v4864_v31 = vld [vmem:[%s7159_s14 + $0x35] sm:$0xff] }
  0xcd   : > { %6384 = vmatmul.mubr.msk.f32.vlgmr.msra.gmra.mrb[0].mxu0 %vm620_vm1, %v4351_v38  ;;  %v4869_v38 = vld [vmem:[%s7159_s14 + $0x5d] sm:$0xff] }
  0xce   : > { %6158 = vmatmul.mubr.msk.f32.gmra.mrb[8].mxu1 %vm620_vm1, %v1979_v32  ;;  %6399 = vmatpush3.msk.msra.mxu0 %vm651_vm0, %v5660_v26  ;;  %v4699_v26 = vld [vmem:[%s7159_s14 + $0x5c] sm:$0xff] }
  0xcf   : > { %6162 = vmatprep.mubr.msk.f32.mxu1 %vm620_vm1, %v2140_v33  ;;  %6386 = vmatprep.mubr.msk.f32.mxu0 %vm620_vm1, %v4352_v40  ;;  %v4865_v32 = vld [vmem:[%s7159_s14 + $0x3d] sm:$0xff]  ;;  %v4866_v33 = vld [vmem:[%s7159_s14 + $0x45] sm:$0xff] }
  0xd0   : > { %6415 = vmatprep.subr.msk.mxu0 %vm651_vm0, %v5672_v42  ;;  %v2827_v40 = vld [vmem:[%s6946_s16 + $0x43] sm:$0xff] }
  0xd1   : > { %6387 = vmatmul.mubr.msk.f32.gmra.mrb[2].mxu0 %vm620_vm1, %v4353_v44  ;;  %v2829_v44 = vld [vmem:[%s6946_s16 + $0x53] sm:$0xff] }
  0xd2   : > { %6163 = vmatmul.mubr.msk.f32.vlgmr.msra.gmra.mrb[0].mxu1 %vm620_vm1, %v2141_v36  ;;  %6389 = vmatprep.mubr.msk.f32.mxu0 %vm620_vm1, %v4354_v45  ;;  %v2659_v36 = vld [vmem:[%s6946_s16 + $0x52] sm:$0xff] }
  0xd3   : > { %6178 = vmatpush3.msk.msra.mxu1 %vm651_vm0, %v5504_v24  ;;  %6165 = vmatprep.mubr.msk.f32.mxu1 %vm620_vm1, %v2142_v37  ;;  %v2488_v24 = vld [vmem:[%s6946_s16 + $0x42] sm:$0xff]  ;;  %v5033_v45 = vld [vmem:[%s7159_s14 + $0x2e] sm:$0xff] }
  0xd4   : > { %6194 = vmatprep.subr.msk.mxu1 %vm651_vm0, %v5516_v39  ;;  %v2826_v37 = vld [vmem:[%s6946_s16 + $0x3b] sm:$0xff] }
  0xd5   : > { %6390 = vmatmul.mubr.msk.f32.gmra.mrb[4].mxu0 %vm620_vm1, %v4355_v48  ;;  %v5036_v48 = vld [vmem:[%s7159_s14 + $0x46] sm:$0xff] }
  0xd6   : > { %6166 = vmatmul.mubr.msk.f32.gmra.mrb[2].mxu1 %vm620_vm1, %v2143_v41  ;;  %6392 = vmatprep.mubr.msk.f32.mxu0 %vm620_vm1, %v4356_v49  ;;  %v2828_v41 = vld [vmem:[%s6946_s16 + $0x4b] sm:$0xff]  ;;  %s6743_s16 = smul.u32 40, %s7617_s19 }
  0xd7   : > { %6168 = vmatprep.mubr.msk.f32.mxu1 %vm620_vm1, %v2144_v43  ;;  %v5032_v43 = vld [vmem:[%s7159_s14 + $0x26] sm:$0xff]  ;;  %v5037_v49 = vld [vmem:[%s7159_s14 + $0x4e] sm:$0xff] }
  0xd8   : > { %s599_s25 = sadd.s32 %s6743_s16, %s6742_s12 }
  0xd9   : > { %6393 = vmatmul.mubr.msk.f32.gmra.mrb[6].mxu0 %vm620_vm1, %v4357_v52  ;;  %s5383_s8 = sshll.u32 %s599_s25, 3 }
  0xda   : > { %6169 = vmatmul.mubr.msk.f32.gmra.mrb[4].mxu1 %vm620_vm1, %v2145_v46  ;;  %6395 = vmatprep.mubr.msk.f32.mxu0 %vm620_vm1, %v4358_v53  ;;  %v5034_v46 = vld [vmem:[%s7159_s14 + $0x36] sm:$0xff]  ;;  %s7561_s26 = scalar_lea.vmem %s7603_s5, %s5383_s8 }
  0xdb   : > { %6171 = vmatprep.mubr.msk.f32.mxu1 %vm620_vm1, %v2146_v47  ;;  %v5035_v47 = vld [vmem:[%s7159_s14 + $0x3e] sm:$0xff] }
  0xdd   : > { %6396 = vmatmul.mubr.msk.f32.gmra.mrb[8].mxu0 %vm620_vm1, %v4359_v56 }
  0xde   : > { %6172 = vmatmul.mubr.msk.f32.gmra.mrb[6].mxu1 %vm620_vm1, %v2147_v50  ;;  %6400 = vmatprep.mubr.msk.f32.mxu0 %vm620_vm1, %v4520_v57  ;;  %v5038_v50 = vld [vmem:[%s7159_s14 + $0x56] sm:$0xff] }
  0xdf   : > { %6174 = vmatprep.mubr.msk.f32.mxu1 %vm620_vm1, %v2148_v51  ;;  %v5039_v51 = vld [vmem:[%s7159_s14 + $0x5e] sm:$0xff] }
  0xe1   : > { %6401 = vmatmul.mubr.msk.f32.vlgmr.msra.gmra.mrb[0].mxu0 %vm620_vm1, %v4521_v60 }
  0xe2   : > { %6175 = vmatmul.mubr.msk.f32.gmra.mrb[8].mxu1 %vm620_vm1, %v2149_v54  ;;  %6416 = vmatpush3.msk.msra.mxu0 %vm651_vm0, %v5672_v42  ;;  %v5031_v42 = vld [vmem:[%s7159_s14 + $0x1e] sm:$0xff] }
  0xe3   : > { %6179 = vmatprep.mubr.msk.f32.mxu1 %vm620_vm1, %v2310_v55  ;;  %6403 = vmatprep.mubr.msk.f32.mxu0 %vm620_vm1, %v4522_v62 }
  0xe4   : > { %6432 = vmatprep.subr.msk.mxu0 %vm651_vm0, %v5684_v0 }
  0xe5   : > { %6404 = vmatmul.mubr.msk.f32.gmra.mrb[2].mxu0 %vm620_vm1, %v4523_v2 }
  0xe6   : > { %6180 = vmatmul.mubr.msk.f32.vlgmr.msra.gmra.mrb[0].mxu1 %vm620_vm1, %v2311_v58  ;;  %6406 = vmatprep.mubr.msk.f32.mxu0 %vm620_vm1, %v4524_v3  ;;  %v5384_v58 = vld [vmem:[%s7602_s4] ss:$0 sm:$0xff] }
  0xe7   : > { %6195 = vmatpush3.msk.msra.mxu1 %vm651_vm0, %v5516_v39  ;;  %6182 = vmatprep.mubr.msk.f32.mxu1 %vm620_vm1, %v2312_v59  ;;  %v5030_v39 = vld [vmem:[%s7159_s14 + $0x16] sm:$0xff] }
  0xe8   : > { %6211 = vmatprep.subr.msk.mxu1 %vm651_vm0, %v5528_v61 }
  0xe9   : > { %6407 = vmatmul.mubr.msk.f32.gmra.mrb[4].mxu0 %vm620_vm1, %v4525_v6 }
  0xea   : > { %6183 = vmatmul.mubr.msk.f32.gmra.mrb[2].mxu1 %vm620_vm1, %v2313_v63  ;;  %6409 = vmatprep.mubr.msk.f32.mxu0 %vm620_vm1, %v4526_v7 }
  0xeb   : > { %6185 = vmatprep.mubr.msk.f32.mxu1 %vm620_vm1, %v2314_v1 }
  0xed   : > { %6410 = vmatmul.mubr.msk.f32.gmra.mrb[6].mxu0 %vm620_vm1, %v4527_v10 }
  0xee   : > { %6186 = vmatmul.mubr.msk.f32.gmra.mrb[4].mxu1 %vm620_vm1, %v2315_v4  ;;  %6412 = vmatprep.mubr.msk.f32.mxu0 %vm620_vm1, %v4528_v11 }
  0xef   : > { %6188 = vmatprep.mubr.msk.f32.mxu1 %vm620_vm1, %v2316_v5 }
  0xf1   : > { %6413 = vmatmul.mubr.msk.f32.gmra.mrb[8].mxu0 %vm620_vm1, %v4529_v14 }
  0xf2   : > { %6189 = vmatmul.mubr.msk.f32.gmra.mrb[6].mxu1 %vm620_vm1, %v2317_v8  ;;  %6417 = vmatprep.mubr.msk.f32.mxu0 %vm620_vm1, %v4521_v60 }
  0xf3   : > { %6191 = vmatprep.mubr.msk.f32.mxu1 %vm620_vm1, %v2318_v9 }
  0xf5   : > { %6418 = vmatmul.mubr.msk.f32.vlgmr.msra.gmra.mrb[0].mxu0 %vm620_vm1, %v4522_v62 }
  0xf6   : > { %6192 = vmatmul.mubr.msk.f32.gmra.mrb[8].mxu1 %vm620_vm1, %v2319_v12  ;;  %6433 = vmatpush3.msk.msra.mxu0 %vm651_vm0, %v5684_v0 }
  0xf7   : > { %6196 = vmatprep.mubr.msk.f32.mxu1 %vm620_vm1, %v2480_v13  ;;  %6420 = vmatprep.mubr.msk.f32.mxu0 %vm620_vm1, %v4523_v2 }
  0xf8   : > { %6449 = vmatprep.subr.msk.mxu0 %vm651_vm0, %v5696_v18 }
  0xf9   : > { %6421 = vmatmul.mubr.msk.f32.gmra.mrb[2].mxu0 %vm620_vm1, %v4524_v3 }
  0xfa   : > { %6197 = vmatmul.mubr.msk.f32.vlgmr.msra.gmra.mrb[0].mxu1 %vm620_vm1, %v2481_v15  ;;  %6423 = vmatprep.mubr.msk.f32.mxu0 %vm620_vm1, %v4525_v6 }
  0xfb   : > { %6212 = vmatpush3.msk.msra.mxu1 %vm651_vm0, %v5528_v61  ;;  %6199 = vmatprep.mubr.msk.f32.mxu1 %vm620_vm1, %v2482_v16 }
  0xfc   : > { %6466 = vmatprep.subr.msk.mxu1 %vm651_vm0, %v6784_v20 }
  0xfd   : > { %6424 = vmatmul.mubr.msk.f32.gmra.mrb[4].mxu0 %vm620_vm1, %v4526_v7 }
  0xfe   : > { %6200 = vmatmul.mubr.msk.f32.gmra.mrb[2].mxu1 %vm620_vm1, %v2483_v17  ;;  %6426 = vmatprep.mubr.msk.f32.mxu0 %vm620_vm1, %v4527_v10 }
  0xff   : > { %6202 = vmatprep.mubr.msk.f32.mxu1 %vm620_vm1, %v2484_v19 }
 0x101   : > { %6427 = vmatmul.mubr.msk.f32.gmra.mrb[6].mxu0 %vm620_vm1, %v4528_v11 }
 0x102   : > { %6203 = vmatmul.mubr.msk.f32.gmra.mrb[4].mxu1 %vm620_vm1, %v2485_v21  ;;  %6429 = vmatprep.mubr.msk.f32.mxu0 %vm620_vm1, %v4529_v14 }
 0x103   : > { %6205 = vmatprep.mubr.msk.f32.mxu1 %vm620_vm1, %v2486_v22 }
 0x105   : > { %6430 = vmatmul.mubr.msk.f32.gmra.mrb[8].mxu0 %vm620_vm1, %v4699_v26 }
 0x106   : > { %6206 = vmatmul.mubr.msk.f32.gmra.mrb[6].mxu1 %vm620_vm1, %v2487_v23  ;;  %6434 = vmatprep.mubr.msk.f32.mxu0 %vm620_vm1, %v4860_v27 }
 0x107   : > { %6208 = vmatprep.mubr.msk.f32.mxu1 %vm620_vm1, %v2488_v24 }
 0x109   : > { %6435 = vmatmul.mubr.msk.f32.vlgmr.msra.gmra.mrb[0].mxu0 %vm620_vm1, %v4861_v28 }
 0x10a   : > { %6209 = vmatmul.mubr.msk.f32.gmra.mrb[8].mxu1 %vm620_vm1, %v2489_v25  ;;  %6450 = vmatpush3.msk.msra.mxu0 %vm651_vm0, %v5696_v18 }
 0x10b   : > { %6213 = vmatprep.mubr.msk.f32.mxu1 %vm620_vm1, %v2481_v15  ;;  %6437 = vmatprep.mubr.msk.f32.mxu0 %vm620_vm1, %v4862_v29 }
 0x10d   : > { %6438 = vmatmul.mubr.msk.f32.gmra.mrb[2].mxu0 %vm620_vm1, %v4863_v30 }
 0x10e   : > { %6214 = vmatmul.mubr.msk.f32.vlgmr.msra.gmra.mrb[0].mxu1 %vm620_vm1, %v2482_v16  ;;  %6440 = vmatprep.mubr.msk.f32.mxu0 %vm620_vm1, %v4864_v31 }
 0x10f   : > { %6467 = vmatpush3.msk.msra.mxu1 %vm651_vm0, %v6784_v20  ;;  %6216 = vmatprep.mubr.msk.f32.mxu1 %vm620_vm1, %v2483_v17 }
 0x111   : > { %6441 = vmatmul.mubr.msk.f32.gmra.mrb[4].mxu0 %vm620_vm1, %v4865_v32 }
 0x112   : > { %6217 = vmatmul.mubr.msk.f32.gmra.mrb[2].mxu1 %vm620_vm1, %v2484_v19  ;;  %6443 = vmatprep.mubr.msk.f32.mxu0 %vm620_vm1, %v4866_v33 }
 0x113   : > { %6219 = vmatprep.mubr.msk.f32.mxu1 %vm620_vm1, %v2485_v21 }
 0x115   : > { %6444 = vmatmul.mubr.msk.f32.gmra.mrb[6].mxu0 %vm620_vm1, %v4867_v34 }
 0x116   : > { %6220 = vmatmul.mubr.msk.f32.gmra.mrb[4].mxu1 %vm620_vm1, %v2486_v22  ;;  %6446 = vmatprep.mubr.msk.f32.mxu0 %vm620_vm1, %v4868_v35 }
 0x117   : > { %6222 = vmatprep.mubr.msk.f32.mxu1 %vm620_vm1, %v2487_v23 }
 0x119   : > { %6447 = vmatmul.mubr.msk.f32.gmra.mrb[8].mxu0 %vm620_vm1, %v4869_v38 }
 0x11a   : > { %6223 = vmatmul.mubr.msk.f32.gmra.mrb[6].mxu1 %vm620_vm1, %v2488_v24  ;;  %6451 = vmatprep.mubr.msk.f32.mxu0 %vm620_vm1, %v5030_v39 }
 0x11b   : > { %6225 = vmatprep.mubr.msk.f32.mxu1 %vm620_vm1, %v2489_v25 }
 0x11d   : > { %6452 = vmatmul.mubr.msk.f32.vlgmr.msra.gmra.mrb[0].mxu0 %vm620_vm1, %v5031_v42 }
 0x11e   : > { %6226 = vmatmul.mubr.msk.f32.gmra.mrb[8].mxu1 %vm620_vm1, %v2659_v36  ;;  %6454 = vmatprep.mubr.msk.f32.mxu0 %vm620_vm1, %v5032_v43 }
 0x11f   : > { %6239 = vmatprep.mubr.msk.f32.mxu1 %vm620_vm1, %v2826_v37 }
 0x121   : > { %6455 = vmatmul.mubr.msk.f32.gmra.mrb[2].mxu0 %vm620_vm1, %v5033_v45 }
 0x122   : > { %6240 = vmatmul.mubr.msk.f32.vlgmr.msra.gmra.mrb[6].mxu1 %vm620_vm1, %v2827_v40  ;;  %6457 = vmatprep.mubr.msk.f32.mxu0 %vm620_vm1, %v5034_v46 }
 0x123   : > { %6242 = vmatprep.mubr.msk.f32.mxu1 %vm620_vm1, %v2828_v41 }
 0x125   : > { %6458 = vmatmul.mubr.msk.f32.gmra.mrb[4].mxu0 %vm620_vm1, %v5035_v47 }
 0x126   : > { %6243 = vmatmul.mubr.msk.f32.gmra.mrb[8].mxu1 %vm620_vm1, %v2829_v44  ;;  %6460 = vmatprep.mubr.msk.f32.mxu0 %vm620_vm1, %v5036_v48 }
 0x129   : > { %6461 = vmatmul.mubr.msk.f32.gmra.mrb[6].mxu0 %vm620_vm1, %v5037_v49 }
 0x12a   : > { %6463 = vmatprep.mubr.msk.f32.mxu0 %vm620_vm1, %v5038_v50 }
 0x12d   : > { %6464 = vmatmul.mubr.msk.f32.gmra.mrb[8].mxu0 %vm620_vm1, %v5039_v51 }
 0x1e1   : > { %v6215_v52 = vpop.f32.mrb[0].mxu1 }
 0x1e2   : > { %v2761_v53 = vpop.f32.mrb[1].mxu1  ;;  %v6468_v60 = vadd.f32 %v6215_v52, %v5384_v58 }
 0x1e3   : > { %v6470_v62 = vadd.f32 %v5384_v58, %v2761_v53 }
 0x1e5   : > { %v6218_v54 = vpop.f32.mrb[2].mxu1 }
 0x1e6   : > { %v2771_v55 = vpop.f32.mrb[3].mxu1  ;;  %v6472_v4 = vadd.f32 %v6218_v54, %v5384_v58 }
 0x1e7   : > { %v6474_v6 = vadd.f32 %v5384_v58, %v2771_v55 }
 0x1e9   : > { %v6221_v56 = vpop.f32.mrb[4].mxu1 }
 0x1ea   : > { %v2781_v57 = vpop.f32.mrb[5].mxu1  ;;  %v6476_v11 = vadd.f32 %v6221_v56, %v5384_v58 }
 0x1eb   : > { %v6478_v12 = vadd.f32 %v5384_v58, %v2781_v57 }
 0x1f0   : > { %v6453_v63 = vpop.f32.mrb[0].mxu0 }
 0x1f1   : > { %v6469_v0 = vadd.f32 %v6468_v60, %v6453_v63  ;;  %v5141_v1 = vpop.f32.mrb[1].mxu0 }
 0x1f2   : > { %v6471_v2 = vadd.f32 %v6470_v62, %v5141_v1 }
 0x1f3   : > { %5202 = vst.msk [vmem:[%s7561_s26 + $0x8] sm:$0xff] %vm5200_vm2, %v6469_v0 }
 0x1f4   : > { %5201 = vst.msk [vmem:[%s7561_s26] sm:$0xff] %vm5200_vm2, %v6471_v2  ;;  %v6456_v7 = vpop.f32.mrb[2].mxu0 }
 0x1f5   : > { %v6241_v59 = vpop.f32.mrb[6].mxu1  ;;  %v6473_v8 = vadd.f32 %v6472_v4, %v6456_v7  ;;  %v5151_v9 = vpop.f32.mrb[3].mxu0 }
 0x1f6   : > { %v2961_v61 = vpop.f32.mrb[7].mxu1  ;;  %v6475_v10 = vadd.f32 %v6474_v6, %v5151_v9  ;;  %v6480_v17 = vadd.f32 %v6241_v59, %v5384_v58 }
 0x1f7   : > { %5204 = vst.msk [vmem:[%s7561_s26 + $0x18] sm:$0xff] %vm5200_vm2, %v6473_v8  ;;  %v6482_v18 = vadd.f32 %v5384_v58, %v2961_v61 }
 0x1f8   : > { %5203 = vst.msk [vmem:[%s7561_s26 + $0x10] sm:$0xff] %vm5200_vm2, %v6475_v10  ;;  %v6459_v13 = vpop.f32.mrb[4].mxu0 }
 0x1f9   : > { %v6244_v3 = vpop.f32.mrb[8].mxu1  ;;  %v6477_v14 = vadd.f32 %v6476_v11, %v6459_v13  ;;  %v5161_v15 = vpop.f32.mrb[5].mxu0 }
 0x1fa   : > { %v2971_v5 = vpop.f32.mrb[9].mxu1  ;;  %v6479_v16 = vadd.f32 %v6478_v12, %v5161_v15  ;;  %v6484_v23 = vadd.f32 %v6244_v3, %v5384_v58 }
 0x1fb   : > { %5206 = vst.msk [vmem:[%s7561_s26 + $0x28] sm:$0xff] %vm5200_vm2, %v6477_v14  ;;  %v6486_v24 = vadd.f32 %v5384_v58, %v2971_v5 }
 0x1fc   : > { %5205 = vst.msk [vmem:[%s7561_s26 + $0x20] sm:$0xff] %vm5200_vm2, %v6479_v16  ;;  %v6462_v19 = vpop.f32.mrb[6].mxu0 }
 0x1fd   : > { %v6481_v20 = vadd.f32 %v6480_v17, %v6462_v19  ;;  %v5171_v21 = vpop.f32.mrb[7].mxu0 }
 0x1fe   : > { %v6483_v22 = vadd.f32 %v6482_v18, %v5171_v21 }
 0x1ff   : > { %5208 = vst.msk [vmem:[%s7561_s26 + $0x38] sm:$0xff] %vm5200_vm2, %v6481_v20 }
 0x200   : > { %5207 = vst.msk [vmem:[%s7561_s26 + $0x30] sm:$0xff] %vm5200_vm2, %v6483_v22  ;;  %v6465_v25 = vpop.f32.mrb[8].mxu0 }
 0x201   : > { %v6485_v26 = vadd.f32 %v6484_v23, %v6465_v25  ;;  %v5181_v27 = vpop.f32.mrb[9].mxu0 }
 0x202   : > { %v6487_v28 = vadd.f32 %v6486_v24, %v5181_v27 }
 0x203   : > { %5210 = vst.msk [vmem:[%s7561_s26 + $0x48] sm:$0xff] %vm5200_vm2, %v6485_v26 }
 0x204   : > { %5209 = vst.msk [vmem:[%s7561_s26 + $0x40] sm:$0xff] %vm5200_vm2, %v6487_v28 }
 0x205 PF: > { %s15_s22 = sadd.s32 1, %s6823_s22   ;;  %s7604_s18 = smov %s6815_s20 }
 0x206   : > { %p12_p2 = scmp.ge.s32.totalorder %s15_s22, 10   ;;  %s7605_s19 = smov %s6819_s21 }
 0x207   : > { %s7606_s20 = smov %s7609_s23  ;;  %s7607_s21 = smov %s7613_s24 }
 0x208   :  { %14 = sbr.rel (!%p12_p2) target bundleno = 3 (0x3), region = 102 }

</bundles_post_ra>
